<compile_context>
chip_gen: v6e
topology: v6e:2x2x1
jax: 0.10.0
libtpu: 0.0.40
codegen_flags: <defaults>
</compile_context>

<pallas_src>
import jax
import jax.numpy as jnp
from jax.experimental import pallas as pl
from jax.experimental.pallas import tpu as pltpu

NEG_SLOPE = 0.01          # nn.LeakyReLU default
IN_EPS = 1e-5             # nn.InstanceNorm2d default
GRID_HW = 16              # 16x16 token grid (256 tokens)
N_TOK = GRID_HW * GRID_HW
PAD = 16                  # zero-pad rows around the flattened token axis (mult. of 8)
MAP_ROWS = N_TOK + 2 * PAD
EMBED_K = 128             # patch-embed contraction dim padded 48 -> 128


def _round128(c):
    return max(128, ((c + 127) // 128) * 128)


# ---------------------------------------------------------------------------
# Pallas kernels
# ---------------------------------------------------------------------------
def _embed_kernel(x_ref, w_ref, b_ref, tok_ref, nchw_ref):
    # x_ref (1, 256, 128) f32, w_ref (128, C) bf16, b_ref (1, C) f32.
    t = jnp.dot(x_ref[0].astype(jnp.bfloat16), w_ref[...],
                preferred_element_type=jnp.float32) + b_ref[...]
    tok_ref[0] = t
    # Channel-major (NCHW) layout produced in-kernel (XLU transpose is free here;
    # saves an XLA transpose op plus one HBM round trip of the feature map).
    nchw_ref[0] = jnp.transpose(t, (1, 0))


def _proj_head_kernel(x_ref,
                      w1_ref, b1_ref, w2_ref, b2_ref,
                      w3_ref, b3_ref, w4_ref, b4_ref,
                      wf_ref, bf_ref, ws_ref, bs_ref,
                      proj_ref, s_ref, pool_ref,
                      pc_ref, pml_ref, pmr_ref):
    """Fused ProjLayer (4x conv3x3 -> InstanceNorm2d -> LeakyReLU) followed by
    net_fusion -> net_s and adaptive_avg_pool2d, all VMEM-resident.

    The 3x3 conv is 9 shifted (256, Cin) @ (Cin, Cout) MXU matmuls over three
    zero-padded bf16 token maps held in scratch:
      pc  : unshifted tokens                                  (dw =  0 taps)
      pml : tokens shifted +1 row, last grid column masked    (dw = -1 taps)
      pmr : tokens shifted -1 row, first grid column masked   (dw = +1 taps)
    so every conv read is an aligned slice starting at PAD + 16*dh and the
    column-wrap masks are applied once per block instead of six times.
    """
    # Column-wrap masks (depend only on token index mod 16); built once.
    col = jax.lax.broadcasted_iota(jnp.int32, (N_TOK, 1), 0) % GRID_HW
    mask_last = (col < GRID_HW - 1).astype(jnp.bfloat16)    # zero where col == 15
    mask_first = (col >= 1).astype(jnp.bfloat16)            # zero where col == 0

    # Zero the token maps (pad strips must be zero).  bf16 + PAD=16 makes this a
    # handful of vreg stores; done every grid step so it is correct on any
    # megacore partitioning of the "parallel" batch axis.
    zeros = jnp.zeros((MAP_ROWS, pc_ref.shape[1]), jnp.bfloat16)
    pc_ref[...] = zeros
    pml_ref[...] = zeros
    pmr_ref[...] = zeros

    def stage(y, width):
        # Cast the current block input to bf16 once and write the three maps.
        yb = y.astype(jnp.bfloat16)
        pc_ref[PAD:PAD + N_TOK, :width] = yb
        pml_ref[PAD + 1:PAD + 1 + N_TOK, :width] = yb * mask_last
        pmr_ref[PAD - 1:PAD - 1 + N_TOK, :width] = yb * mask_first

    def conv_in_lrelu(w_ref, b_ref):
        cin_p = w_ref.shape[1]
        acc = None
        s = 0
        for dh in (-1, 0, 1):
            base = PAD + GRID_HW * dh
            for m_ref in (pml_ref, pc_ref, pmr_ref):          # dw = -1, 0, +1
                xs = m_ref[base:base + N_TOK, :cin_p]          # bf16, aligned slice
                c = jnp.dot(xs, w_ref[s], preferred_element_type=jnp.float32)
                acc = c if acc is None else acc + c
                s += 1
        y = acc + b_ref[...]
        # InstanceNorm2d (no affine, biased variance over the 256 tokens),
        # single-pass statistics in f32, then LeakyReLU.
        mean = jnp.mean(y, axis=0, keepdims=True)
        meansq = jnp.mean(y * y, axis=0, keepdims=True)
        var = jnp.maximum(meansq - mean * mean, 0.0)
        y = (y - mean) * jax.lax.rsqrt(var + IN_EPS)
        return jnp.maximum(y, NEG_SLOPE * y)

    y = x_ref[0]                                               # (256, C0) f32
    for w_ref, b_ref in ((w1_ref, b1_ref), (w2_ref, b2_ref),
                         (w3_ref, b3_ref), (w4_ref, b4_ref)):
        assert y.shape[1] == w_ref.shape[1]
        stage(y, w_ref.shape[1])
        y = conv_in_lrelu(w_ref, b_ref)

    # feats_proj emitted directly in channel-major (NCHW) layout.
    proj_ref[0] = jnp.transpose(y, (1, 0))

    # net_fusion -> net_s + adaptive_avg_pool2d(mid, 1); `mid` never leaves VMEM.
    mid = jnp.dot(y.astype(jnp.bfloat16), wf_ref[...],
                  preferred_element_type=jnp.float32) + bf_ref[...]
    pool_ref[0] = jnp.mean(mid, axis=0, keepdims=True)
    s_ref[0] = jnp.dot(mid.astype(jnp.bfloat16), ws_ref[...],
                       preferred_element_type=jnp.float32) + bs_ref[...]


# ---------------------------------------------------------------------------
# Wrappers
# ---------------------------------------------------------------------------
def token_embed(x, w, b):
    """(B, N, K) @ (K, C) + b -> tokens (B, N, C) and channel-major (B, C, N)."""
    B, N, K = x.shape
    C = w.shape[1]
    return pl.pallas_call(
        _embed_kernel,
        out_shape=(jax.ShapeDtypeStruct((B, N, C), jnp.float32),
                   jax.ShapeDtypeStruct((B, C, N), jnp.float32)),
        grid=(B,),
        in_specs=[pl.BlockSpec((1, N, K), lambda i: (i, 0, 0)),
                  pl.BlockSpec((K, C), lambda i: (0, 0)),
                  pl.BlockSpec((1, C), lambda i: (0, 0))],
        out_specs=(pl.BlockSpec((1, N, C), lambda i: (i, 0, 0)),
                   pl.BlockSpec((1, C, N), lambda i: (i, 0, 0))),
        compiler_params=pltpu.CompilerParams(dimension_semantics=("parallel",)),
    )(x, w, b)


class ProjLayerPallas:
    """Parameters for ProjLayer: 4x [Conv2d(3x3, pad=1) + InstanceNorm2d +
    LeakyReLU], in_c -> in_c//2 -> in_c//4 -> in_c//2 -> out_c, stored in
    per-shift matmul form (9, Cin_pad, Cout_pad) bf16.  Channel counts are
    zero-padded to lane-aligned sizes; padded channels provably stay exactly 0
    through conv + InstanceNorm + LeakyReLU, so semantics are unchanged."""

    def __init__(self, key, in_c, out_c):
        assert in_c % 128 == 0 and out_c % 128 == 0, "boundary channels must be lane-aligned"
        dims = [(in_c, in_c // 2), (in_c // 2, in_c // 4),
                (in_c // 4, in_c // 2), (in_c // 2, out_c)]
        self.in_c, self.out_c = in_c, out_c
        self.params = []
        c_max = in_c
        for ci, co in dims:
            cip, cop = _round128(ci), _round128(co)
            c_max = max(c_max, cip, cop)
            key, kw, kb = jax.random.split(key, 3)
            w = jax.random.normal(kw, (9, ci, co), jnp.float32) / jnp.sqrt(9.0 * ci)
            b = 0.01 * jax.random.normal(kb, (co,), jnp.float32)
            w_p = jnp.zeros((9, cip, cop), jnp.float32).at[:, :ci, :co].set(w)
            b_p = jnp.zeros((1, cop), jnp.float32).at[0, :co].set(b)
            self.params.append((w_p.astype(jnp.bfloat16), b_p))
        self.c_max = c_max


class ViTAD_LGC_Pallas:
    def __init__(self, key, embed_dim=384, patch=4, img_ch=3):
        k0, k1, k2, k3 = jax.random.split(key, 4)
        self.patch = patch
        self.img_ch = img_ch
        self.embed_dim = embed_dim

        def linear_params(k, din, dout, din_pad=None):
            kw, kb = jax.random.split(k)
            w = jax.random.normal(kw, (din, dout), jnp.float32) / jnp.sqrt(float(din))
            b = 0.01 * jax.random.normal(kb, (1, dout), jnp.float32)
            if din_pad is not None and din_pad > din:
                w = jnp.zeros((din_pad, dout), jnp.float32).at[:din].set(w)
            return w.astype(jnp.bfloat16), b

        # TODO(synk): net_t / net_fusion / net_s backbones (get_model(...)) are
        # external; stood in by deterministic token-wise linear layers.
        self.embed_w, self.embed_b = linear_params(
            k0, img_ch * patch * patch, embed_dim, din_pad=EMBED_K)
        self.fusion_w, self.fusion_b = linear_params(k1, embed_dim, embed_dim)
        self.s_w, self.s_b = linear_params(k2, embed_dim, embed_dim)
        self.proj_layer = ProjLayerPallas(k3, embed_dim, embed_dim)   # ProjLayer(384, 384)

    # -- net_t stand-in -----------------------------------------------------
    def _net_t(self, imgs):
        B, C, H, W = imgs.shape
        p = self.patch
        x = imgs.reshape(B, C, H // p, p, W // p, p)
        x = jnp.transpose(x, (0, 2, 4, 1, 3, 5)).reshape(
            B, (H // p) * (W // p), C * p * p)
        k = C * p * p
        if k < EMBED_K:   # lane-dense MXU K pass
            x = jnp.pad(x, ((0, 0), (0, 0), (0, EMBED_K - k)))
        tokens, tokens_nchw = token_embed(x, self.embed_w, self.embed_b)
        return [tokens], [tokens], tokens_nchw

    # -- ProjLayer + net_fusion + net_s + pooling, one fused pallas_call -----
    def _proj_fusion_s(self, x_tokens):
        B, N, C = x_tokens.shape
        pj = self.proj_layer
        assert N == N_TOK and C == pj.in_c
        D = self.embed_dim

        args = [x_tokens]
        in_specs = [pl.BlockSpec((1, N, C), lambda i: (i, 0, 0))]
        for w, b in pj.params:
            in_specs.append(pl.BlockSpec(w.shape, lambda i: (0, 0, 0)))
            in_specs.append(pl.BlockSpec(b.shape, lambda i: (0, 0)))
            args += [w, b]
        for w, b in ((self.fusion_w, self.fusion_b), (self.s_w, self.s_b)):
            in_specs.append(pl.BlockSpec(w.shape, lambda i: (0, 0)))
            in_specs.append(pl.BlockSpec(b.shape, lambda i: (0, 0)))
            args += [w, b]

        proj_nchw, feats_s, pooled = pl.pallas_call(
            _proj_head_kernel,
            out_shape=(jax.ShapeDtypeStruct((B, pj.out_c, N), jnp.float32),
                       jax.ShapeDtypeStruct((B, N, D), jnp.float32),
                       jax.ShapeDtypeStruct((B, 1, D), jnp.float32)),
            grid=(B,),
            in_specs=in_specs,
            out_specs=(pl.BlockSpec((1, pj.out_c, N), lambda i: (i, 0, 0)),
                       pl.BlockSpec((1, N, D), lambda i: (i, 0, 0)),
                       pl.BlockSpec((1, 1, D), lambda i: (i, 0, 0))),
            scratch_shapes=[pltpu.VMEM((MAP_ROWS, pj.c_max), jnp.bfloat16),
                            pltpu.VMEM((MAP_ROWS, pj.c_max), jnp.bfloat16),
                            pltpu.VMEM((MAP_ROWS, pj.c_max), jnp.bfloat16)],
            compiler_params=pltpu.CompilerParams(
                dimension_semantics=("parallel",),
                vmem_limit_bytes=24 * 1024 * 1024),
        )(*args)
        return proj_nchw, feats_s, pooled.reshape(B, D)

    # -- forward --------------------------------------------------------------
    def forward(self, imgs, aug_imgs=None):
        def to_map(nchw_tokens):   # (B, C, 256) -> (B, C, 16, 16): free reshape
            b, c, _ = nchw_tokens.shape
            return nchw_tokens.reshape(b, c, GRID_HW, GRID_HW)

        feats_t, feats_n, fn_nchw = self._net_t(imgs)
        feats_t = [jax.lax.stop_gradient(f) for f in feats_t]     # .detach()
        feats_n = [jax.lax.stop_gradient(f) for f in feats_n]     # .detach()
        fn_nchw = jax.lax.stop_gradient(fn_nchw)

        if aug_imgs is not None:
            _, feats_n_aug_l, fn_aug_nchw = self._net_t(aug_imgs)
            feats_n_aug = jax.lax.stop_gradient(feats_n_aug_l[0])
            fn_aug_nchw = jax.lax.stop_gradient(fn_aug_nchw)
            # The aug path only needs feats_proj_aug; the fused head extras are dropped.
            proj_aug_nchw, _, _ = self._proj_fusion_s(feats_n_aug)
            feats_n_aug_map = to_map(fn_aug_nchw)
            feats_proj_aug_map = to_map(proj_aug_nchw)
        else:
            feats_n_aug_map = None
            feats_proj_aug_map = None

        proj_nchw, feats_s_tokens, mid_pooled = self._proj_fusion_s(feats_n[0])
        feats_s = [feats_s_tokens]

        return (feats_t, feats_s, mid_pooled,
                to_map(fn_nchw), to_map(proj_nchw),
                feats_n_aug_map, feats_proj_aug_map)


# ---------------------------------------------------------------------------
if __name__ == "__main__":
    key = jax.random.PRNGKey(0)
    k_model, k_img = jax.random.split(key)

    model = ViTAD_LGC_Pallas(k_model)

    B, C_IMG, H = 2, 3, 64           # 64/4 = 16x16 token grid (256 tokens), 384-dim
    imgs = jax.random.normal(k_img, (B, C_IMG, H, H), jnp.float32)

    out = model.forward(imgs, aug_imgs=None)
    out = jax.block_until_ready(out)

    feats_t, feats_s, mid_pooled, fn0, fproj, fn_aug, fproj_aug = out
    assert feats_t[0].shape == (B, 256, 384)
    assert feats_s[0].shape == (B, 256, 384)
    assert mid_pooled.shape == (B, 384)
    assert fn0.shape == (B, 384, 16, 16)
    assert fproj.shape == (B, 384, 16, 16)
    assert fn_aug is None and fproj_aug is None
    assert bool(jnp.all(jnp.isfinite(fproj)))
    assert bool(jnp.all(jnp.isfinite(feats_s[0])))
    assert bool(jnp.all(jnp.isfinite(mid_pooled)))

    print("KERNEL_OK")
</pallas_src>

<mosaic_0001>
module attributes {stable_mosaic.version = 11 : i64} {
  func.func @_embed_kernel(%arg0: i32, %arg1: memref<1x256x128xf32, #tpu.memory_space<vmem>>, %arg2: memref<128x384xbf16, #tpu.memory_space<vmem>>, %arg3: memref<1x384xf32, #tpu.memory_space<vmem>>, %arg4: memref<1x256x384xf32, #tpu.memory_space<vmem>>, %arg5: memref<1x384x256xf32, #tpu.memory_space<vmem>>) attributes {dimension_semantics = [#tpu.dimension_semantics<parallel>], iteration_bounds = array<i64: 2>, scalar_prefetch = 0 : i64, scratch_operands = 0 : i64, tpu.core_type = #tpu.core_type<tc>, window_params = [{transform_indices = @transform_0, window_bounds = array<i64: 1, 256, 128>}, {pipeline_mode = #tpu.pipeline_mode<synchronous>, transform_indices = @transform_1, window_bounds = array<i64: 128, 384>}, {pipeline_mode = #tpu.pipeline_mode<synchronous>, transform_indices = @transform_2, window_bounds = array<i64: 1, 384>}, {transform_indices = @transform_3, window_bounds = array<i64: 1, 256, 384>}, {transform_indices = @transform_4, window_bounds = array<i64: 1, 384, 256>}]} {
    %c0 = arith.constant 0 : index
    %c0_0 = arith.constant 0 : index
    %c0_1 = arith.constant 0 : index
    %0 = vector.load %arg1[%c0, %c0_0, %c0_1] : memref<1x256x128xf32, #tpu.memory_space<vmem>>, vector<1x256x128xf32>
    %1 = vector.shape_cast %0 : vector<1x256x128xf32> to vector<256x128xf32>
    %2 = arith.truncf %1 : vector<256x128xf32> to vector<256x128xbf16>
    %c0_2 = arith.constant 0 : index
    %c0_3 = arith.constant 0 : index
    %3 = vector.load %arg2[%c0_2, %c0_3] : memref<128x384xbf16, #tpu.memory_space<vmem>>, vector<128x384xbf16>
    %cst = arith.constant dense<0.000000e+00> : vector<256x384xf32>
    %4 = tpu.matmul %2, %3, %cst {dimension_numbers = #tpu.dot_dimension_numbers<[1], [0], [0], [1], [0, 0, 1, 1], [], []>} : vector<256x128xbf16>, vector<128x384xbf16>, vector<256x384xf32> -> vector<256x384xf32>
    %c0_4 = arith.constant 0 : index
    %c0_5 = arith.constant 0 : index
    %5 = vector.load %arg3[%c0_4, %c0_5] : memref<1x384xf32, #tpu.memory_space<vmem>>, vector<1x384xf32>
    %6 = vector.broadcast %5 : vector<1x384xf32> to vector<256x384xf32>
    %7 = arith.addf %4, %6 : vector<256x384xf32>
    %c0_6 = arith.constant 0 : index
    %c0_7 = arith.constant 0 : index
    %c0_8 = arith.constant 0 : index
    %8 = vector.load %arg4[%c0_6, %c0_7, %c0_8] : memref<1x256x384xf32, #tpu.memory_space<vmem>>, vector<1x256x384xf32>
    %9 = vector.shape_cast %8 : vector<1x256x384xf32> to vector<256x384xf32>
    %10 = vector.shape_cast %7 : vector<256x384xf32> to vector<1x256x384xf32>
    tpu.vector_store %arg4[%c0_6, %c0_7, %c0_8], %10 {strides = array<i32>} : memref<1x256x384xf32, #tpu.memory_space<vmem>>, vector<1x256x384xf32>,
    %11 = tpu.transpose %7, [1, 0] : vector<256x384xf32> -> vector<384x256xf32>
    %c0_9 = arith.constant 0 : index
    %c0_10 = arith.constant 0 : index
    %c0_11 = arith.constant 0 : index
    %12 = vector.load %arg5[%c0_9, %c0_10, %c0_11] : memref<1x384x256xf32, #tpu.memory_space<vmem>>, vector<1x384x256xf32>
    %13 = vector.shape_cast %12 : vector<1x384x256xf32> to vector<384x256xf32>
    %14 = vector.shape_cast %11 : vector<384x256xf32> to vector<1x384x256xf32>
    tpu.vector_store %arg5[%c0_9, %c0_10, %c0_11], %14 {strides = array<i32>} : memref<1x384x256xf32, #tpu.memory_space<vmem>>, vector<1x384x256xf32>,
    return
  }
  func.func @transform_0(%arg0: i32) -> (i32, i32, i32) {
    %c0_i32 = arith.constant 0 : i32
    %c0_i32_0 = arith.constant 0 : i32
    %c0_i32_1 = arith.constant 0 : i32
    return %arg0, %c0_i32, %c0_i32_0 : i32, i32, i32
  }
  func.func @transform_1(%arg0: i32) -> (i32, i32) {
    %c0_i32 = arith.constant 0 : i32
    %c0_i32_0 = arith.constant 0 : i32
    %c0_i32_1 = arith.constant 0 : i32
    return %c0_i32, %c0_i32_0 : i32, i32
  }
  func.func @transform_2(%arg0: i32) -> (i32, i32) {
    %c0_i32 = arith.constant 0 : i32
    %c0_i32_0 = arith.constant 0 : i32
    %c0_i32_1 = arith.constant 0 : i32
    return %c0_i32, %c0_i32_0 : i32, i32
  }
  func.func @transform_3(%arg0: i32) -> (i32, i32, i32) {
    %c0_i32 = arith.constant 0 : i32
    %c0_i32_0 = arith.constant 0 : i32
    %c0_i32_1 = arith.constant 0 : i32
    return %arg0, %c0_i32, %c0_i32_0 : i32, i32, i32
  }
  func.func @transform_4(%arg0: i32) -> (i32, i32, i32) {
    %c0_i32 = arith.constant 0 : i32
    %c0_i32_0 = arith.constant 0 : i32
    %c0_i32_1 = arith.constant 0 : i32
    return %arg0, %c0_i32, %c0_i32_0 : i32, i32, i32
  }
}

</mosaic_0001>

<bundles_post_ra>
// kernel: tpu_custom_call.1
= control target key start
LH: loop header
LB: loop body
LE: loop exit
PB: predicated region body
PF: predicated region fallthrough
CT: control target
= control target key end

     0   :  { %10 = vsyncpa [#allocation3], 0  ;;  %s2600_s0 = inlined_call_operand.hbm [shape: f32[2,256,128], index: 0, kind: input, shape index: {}]   ;;  %s2601_s1 = inlined_call_operand.hbm [shape: bf16[128,384], index: 1, kind: input, shape index: {}]   ;;  %s2602_s2 = inlined_call_operand.vmem [shape: f32[1,384], index: 2, kind: input, shape index: {}]   ;;  %s2603_s3 = inlined_call_operand.hbm [shape: f32[2,256,384], index: 3, kind: output, shape index: {0}]   ;;  %s2604_s4 = inlined_call_operand.hbm [shape: f32[2,384,256], index: 4, kind: output, shape index: {1}]  }
   0x1   :  { %12 = vsyncpa [#allocation3 + $0x1], 0 }
   0x2   :  { %13 = vsyncpa [#allocation6], 0 }
   0x3   :  { %14 = vsyncpa [#allocation4], 0 }
   0x4   :  { %16 = vsyncpa [#allocation4 + $0x1], 0 }
   0x5   :  { %17 = vsyncpa [#allocation9], 0 }
   0x6   :  { %19 = vsyncpa [#allocation9 + $0x1], 0  ;;  %s1781_s15 = smov 0   ;;  %s1783_s16 = smov 0  }
   0x7   :  { %s1785_s17 = smov 0   ;;  %s1787_s18 = smov 0  }
   0x8 LB: > { %s1802_s19 = sadd.s32 4294967295, %s1741_s18   ;;  %s1356_s20 = sadd.s32 4294967294, %s1741_s18   ;;  %s1741_s18 = sphi %s1787_s18, %s2626_s18   ;;  %s1737_s17 = sphi %s1785_s17, %s2625_s17   ;;  %s1733_s16 = sphi %s1783_s16, %s2624_s16   ;;  %s1729_s15 = sphi %s1781_s15, %s2623_s15  }
   0x9   : > { %p45_p0 = scmp.ne.s32.totalorder %s1733_s16, %s1729_s15  ;;  %p2605_p1 = scmp.eq.s32.totalorder %s1802_s19, 0 }
   0xa   : > { %p117_p3 = scmp.eq.s32.totalorder %s1356_s20, 1  ;;  %p1357_p5 = scmp.ge.s32.totalorder %s1741_s18, 1 }
   0xb   : > { %p1811_p4 = por %p2605_p1, %p45_p0  ;;  %p150_p7 = scmp.lt.s32.totalorder %s1741_s18, 3 }
   0xc   : > { %p1816_p6 = por %p117_p3, %p45_p0  ;;  %s1743_s24 = smov [#allocation5]  }
   0xd   : > { %s2609_s21 = scalar_select %p1811_p4, 1, 0 }
   0xe   : > { %s2610_s22 = scalar_select %p1816_p6, 1, 0 }
   0xf   : > { %p1821_p8 = pnand %p1357_p5, %p150_p7  ;;  %s162_s25 = sshll.u32 %s1743_s24, 4  ;;  %s163_s25 = int_to_ptr.vmem [resolvable:$true] %s162_s25 }
  0x10   : > { %s1835_s27 = sadd.s32 1, %s1741_s18   ;;  %s32_s28 = sadd.s32 1, %s1737_s17 }
  0x11   : > { %s2611_s23 = scalar_select %p1821_p8, 1, 0 }
  0x12   : > { %p1496_p9 = pneg %p1821_p8  ;;  %s29_s29 = ssub.s32 %s1741_s18, %s1835_s27 }
  0x13   : > { %s1600_s30 = scalar_lea.vmem %s163_s25, 3072  ;;  %p1608_p5 = scmp.lt.s32.totalorder %s163_s25, %s163_s25 }
  0x14   : > { %p1830_p11 = pnand %p1496_p9, %p2605_p1  ;;  %p1601_p13 = scmp.ne.s32.totalorder %s163_s25, %s1600_s30 }
  0x15   : > { %p1609_p7 = scmp.lt.s32.totalorder %s1600_s30, %s1600_s30 }
  0x16   : > { %p1591_p12 = pneg %p1830_p11 }
  0x17   : > { %p1610_p10 = por %p1609_p7, %p1608_p5 }
  0x18   : > { %p1603_p0 = pnand %p1601_p13, %p1591_p12 }
  0x1a   : > { %p1604_p3 = pneg %p1603_p0 }
  0x1c   : > { %p1611_p2 = pnand %p1610_p10, %p1604_p3 }
  0x1e   : > { %1614 = shalt.err (!%p1611_p2)
}
  0x1f   : > { %s1744_s5 = smov 192   ;;  %s1745_s6 = smov 12  }
  0x20   : > { %1499 = dma.hbm_to_vmem [thread:$0]  (!%p1830_p11), %s2601_s1, 3072, %s163_s25, [#allocation6], %s1744_s5, %s1744_s5, %s1745_s6  }
  0x21   : > { %p30_p9 = scmp.eq.s32.totalorder %s29_s29, 0  ;;  %p39_p12 = scmp.ne.s32.totalorder %s1737_s17, %s1733_s16 }
  0x22   : > { %p40_p10 = scmp.eq.s32.totalorder %s1741_s18, 0  ;;  %p1512_p2 = scmp.lt.s32.totalorder %s1741_s18, 2 }
  0x23   : > { %s1852_s9 = scalar_select %p30_p9, %s1737_s17, %s32_s28  }
  0x24   : > { %p41_p13 = por %p40_p10, %p39_p12  ;;  %p2613_p0 = scmp.eq.s32.totalorder %s1802_s19, 1 }
  0x25   : > { %s179_s11 = sand.u32 1, %s1737_s17   ;;  %s1394_s12 = sshll.u32 %s1741_s18, 12 }
  0x26   : > { %p1856_p3 = por %p2613_p0, %p39_p12  ;;  %s1360_s13 = sshll.u32 %s179_s11, 8 }
  0x27   : > { %s1865_s24 = scalar_lea.hbm %s2600_s0, %s1394_s12  ;;  %s183_s25 = scalar_lea.vmem [#allocation2], %s1360_s13 }
  0x28   : > { %s2614_s10 = scalar_select %p1856_p3, 1, 0 }
  0x29   : > { %s190_s26 = sshll.u32 %s183_s25, 4  ;;  %p1867_p11 = pnand %p1512_p2, %p41_p13  ;;  %s1871_s26 = int_to_ptr.vmem [resolvable:$true] %s190_s26 }
  0x2a   : > { %s1873_s29 = scalar_lea.sflag [#allocation3], %s179_s11  ;;  %s1615_s30 = scalar_lea.hbm %s1865_s24, 4096 }
  0x2b   : > { %p1616_p5 = scmp.ne.s32.totalorder %s1865_s24, %s1615_s30  ;;  %p1617_p7 = pneg %p1867_p11 }
  0x2c   : > { %s1620_s7 = scalar_lea.hbm %s2600_s0, 8192  ;;  %p1621_p10 = scmp.lt.s32.totalorder %s1865_s24, %s2600_s0 }
  0x2d   : > { %p1618_p9 = pnand %p1617_p7, %p1616_p5  ;;  %p1622_p2 = scmp.lt.s32.totalorder %s1620_s7, %s1615_s30 }
  0x2f   : > { %p1619_p12 = pneg %p1618_p9  ;;  %p1623_p13 = por %p1622_p2, %p1621_p10 }
  0x31   : > { %p1624_p0 = pnand %p1623_p13, %p1619_p12 }
  0x33   : > { %1627 = shalt.err (!%p1624_p0)
}
  0x34   : > { %s1628_s11 = scalar_lea.vmem %s1871_s26, 4096  ;;  %s1746_s13 = smov [#allocation2]  }
  0x35   : > { %p1629_p1 = scmp.ne.s32.totalorder %s1871_s26, %s1628_s11  ;;  %s1633_s14 = sshll.u32 %s1746_s13, 4  ;;  %s1634_s14 = int_to_ptr.vmem [resolvable:$false] %s1633_s14 }
  0x36   : > { %s1635_s20 = scalar_lea.vmem %s1634_s14, 8192  ;;  %p1636_p9 = scmp.lt.s32.totalorder %s1871_s26, %s1634_s14 }
  0x37   : > { %p1631_p6 = pnand %p1629_p1, %p1617_p7  ;;  %p1637_p3 = scmp.lt.s32.totalorder %s1635_s20, %s1628_s11 }
  0x39   : > { %p1632_p5 = pneg %p1631_p6  ;;  %p1638_p4 = por %p1637_p3, %p1636_p9 }
  0x3b   : > { %p1639_p8 = pnand %p1638_p4, %p1632_p5 }
  0x3d   : > { %1642 = shalt.err (!%p1639_p8)
}
  0x3e   : > { %s1747_s25 = smov 128   ;;  %s1748_s30 = smov 8  }
  0x3f   : > { %1503 = dma.hbm_to_vmem [thread:$0]  (!%p1867_p11), %s1865_s24, 4096, %s1871_s26, %s1873_s29, %s1747_s25, %s1747_s25, %s1748_s30  }
  0x40   : > { %p2616_p1 = scmp.ne.s32.totalorder %s2611_s23, 0 }
  0x41   : > { %s1897_s5 = sand.u32 (!%p2616_p1), 1, %s1733_s16   ;;  %p2617_p4 = scmp.ne.s32.totalorder (!%p2616_p1), %s2609_s21, 0 }
  0x42   : > { %202 = sbr.rel (%p2616_p1) target bundleno = 641 (0x281), region = 32  ;;  %s1364_s6 = sshll.u32 (!%p2616_p1), %s1897_s5, 8 }
  0x43   : > { %s205_s7 = scalar_lea.sflag (!%p2616_p1), [#allocation3], %s1897_s5  ;;  %s1901_s8 = scalar_lea.vmem (!%p2616_p1), [#allocation2], %s1364_s6 }
  0x47   : > { %1712 = dma.done.wait (%p2617_p4), %s205_s7, 4096  }
  0x48   : > { %1714 = vsyncadd (%p2617_p4), %s205_s7, 4294963200  ;;  %p2618_p6 = scmp.eq.s32.totalorder %s1802_s19, 0 }
  0x4a   : > { %1716 = dma.done.wait (%p2618_p6), [#allocation6], 3072   ;;  %p2619_p8 = pmov %p2618_p6 }
  0x4b   : > { %v1749_v0 = vmov 0   ;;  %v1557_v1 = vld [vmem:[#allocation5 + $0xac] ss:$12 sps:$4 sm:$0xff]   ;;  %v1559_v2 = vld [vmem:[#allocation5 + $0xa8] ss:$12 sps:$4 sm:$0xff]   ;;  %v243_v17 = vld [vmem:[%s1901_s8] sm:$0xff] }
  0x4c   : > { %1718 = vsyncadd (%p2619_p8), [#allocation6], 4294964224  ;;  %500 = vmatprep.mubr.bf16.mxu0 %v1749_v0  ;;  %620 = vmatprep.mubr.bf16.mxu1 %v1749_v0  ;;  %v1560_v3 = vld [vmem:[#allocation5 + $0x94] ss:$12 sps:$4 sm:$0xff]   ;;  %v1562_v4 = vld [vmem:[#allocation5 + $0x90] ss:$12 sps:$4 sm:$0xff]  }
  0x4d   : > { %468 = vmatprep.subr.bf16.mxu0 %v1557_v1  ;;  %1467 = vmatprep.subr.bf16.mxu1 %v1557_v1  ;;  %v1563_v5 = vld [vmem:[#allocation5 + $0x7c] ss:$12 sps:$4 sm:$0xff]   ;;  %v1565_v6 = vld [vmem:[#allocation5 + $0x78] ss:$12 sps:$4 sm:$0xff]   ;;  %v1568_v8 = vld [vmem:[#allocation5 + $0x60] ss:$12 sps:$4 sm:$0xff]  }
  0x4e   : > { %469 = vmatpush1.bf16.msra.mxu0 %v1559_v2  ;;  %1475 = vmatpush1.bf16.msra.mxu1 %v1559_v2  ;;  %v1566_v7 = vld [vmem:[#allocation5 + $0x64] ss:$12 sps:$4 sm:$0xff]   ;;  %v1569_v9 = vld [vmem:[#allocation5 + $0x4c] ss:$12 sps:$4 sm:$0xff]   ;;  %v1571_v10 = vld [vmem:[#allocation5 + $0x48] ss:$12 sps:$4 sm:$0xff]  }
  0x4f   : > { %470 = vmatprep.subr.bf16.mxu0 %v1560_v3  ;;  %1468 = vmatprep.subr.bf16.mxu1 %v1560_v3  ;;  %v1572_v11 = vld [vmem:[#allocation5 + $0x34] ss:$12 sps:$4 sm:$0xff]   ;;  %v1574_v12 = vld [vmem:[#allocation5 + $0x30] ss:$12 sps:$4 sm:$0xff]   ;;  %v1577_v14 = vld [vmem:[#allocation5 + $0x18] ss:$12 sps:$4 sm:$0xff]  }
  0x50   : > { %v1575_v13 = vld [vmem:[#allocation5 + $0x1c] ss:$12 sps:$4 sm:$0xff]   ;;  %v1578_v15 = vld [vmem:[#allocation5 + $0x4] ss:$12 sps:$4 sm:$0xff]   ;;  %v1580_v16 = vld [vmem:[#allocation5] ss:$12 sps:$4 sm:$0xff]  }
  0x51   : > { %v244_v18 = vld [vmem:[%s1901_s8 + $0x8] sm:$0xff]  ;;  %v267_v19 = vld [vmem:[%s1901_s8 + $0xc0] sm:$0xff]  ;;  %v1581_v21 = vld [vmem:[#allocation5 + $0xb0] ss:$12 sps:$4 sm:$0xff]   ;;  %s1483_s24 = smul.u32 768, %s1897_s5  ;;  %s1207_s20 = scalar_lea.sflag [#allocation4], %s1897_s5 }
  0x52   : > { %471 = vmatpush1.bf16.msra.mxu0 %v1562_v4  ;;  %1476 = vmatpush1.bf16.msra.mxu1 %v1562_v4  ;;  %v268_v20 = vld [vmem:[%s1901_s8 + $0xc8] sm:$0xff]  ;;  %v275_v22 = vpack.c.bf16 %v244_v18, %v243_v17  ;;  %v1582_v24 = vld [vmem:[#allocation5 + $0x98] ss:$12 sps:$4 sm:$0xff]   ;;  %v245_v25 = vld [vmem:[%s1901_s8 + $0x10] sm:$0xff]  ;;  %s1484_s29 = smul.u32 12288, %s1802_s19  ;;  %p2620_p11 = scmp.ne.s32.totalorder %s2614_s10, 0 }
  0x53   : > { %472 = vmatprep.subr.bf16.mxu0 %v1563_v5  ;;  %1469 = vmatprep.subr.bf16.mxu1 %v1563_v5  ;;  %v1917_v23 = vpack.c.bf16 %v268_v20, %v267_v19  ;;  %v246_v26 = vld [vmem:[%s1901_s8 + $0x18] sm:$0xff]  ;;  %v269_v27 = vld [vmem:[%s1901_s8 + $0xd0] sm:$0xff]  ;;  %v1583_v29 = vld [vmem:[#allocation5 + $0x80] ss:$12 sps:$4 sm:$0xff]   ;;  %s1997_s26 = scalar_lea.vmem [#allocation7], %s1483_s24  ;;  %s2384_s28 = scalar_lea.vmem [#allocation8], %s1483_s24 }
  0x54   : > { %v270_v28 = vld [vmem:[%s1901_s8 + $0xd8] sm:$0xff]  ;;  %v276_v30 = vpack.c.bf16 %v246_v26, %v245_v25  ;;  %v1584_v32 = vld [vmem:[#allocation5 + $0x68] ss:$12 sps:$4 sm:$0xff]   ;;  %v247_v33 = vld [vmem:[%s1901_s8 + $0x20] sm:$0xff]  ;;  %s1225_s12 = sshll.u32 %s1997_s26, 4  ;;  %s2456_s14 = scalar_lea.hbm %s2603_s3, %s1484_s29  ;;  %s2459_s12 = int_to_ptr.vmem [resolvable:$true] %s1225_s12 }
  0x55   : > { %v1926_v31 = vpack.c.bf16 %v270_v28, %v269_v27  ;;  %v248_v34 = vld [vmem:[%s1901_s8 + $0x28] sm:$0xff]  ;;  %v271_v35 = vld [vmem:[%s1901_s8 + $0xe0] sm:$0xff]  ;;  %v1585_v37 = vld [vmem:[#allocation5 + $0x50] ss:$12 sps:$4 sm:$0xff]   ;;  %s1643_s25 = scalar_lea.vmem %s2459_s12, 12288  ;;  %s1750_s30 = smov [#allocation7]  }
  0x56   : > { %473 = vmatpush1.bf16.msra.mxu0 %v1565_v6  ;;  %1477 = vmatpush1.bf16.msra.mxu1 %v1565_v6  ;;  %v272_v36 = vld [vmem:[%s1901_s8 + $0xe8] sm:$0xff]  ;;  %v277_v38 = vpack.c.bf16 %v248_v34, %v247_v33  ;;  %v1586_v40 = vld [vmem:[#allocation5 + $0x38] ss:$12 sps:$4 sm:$0xff]   ;;  %v249_v41 = vld [vmem:[%s1901_s8 + $0x30] sm:$0xff]  ;;  %p1644_p3 = scmp.ne.s32.totalorder %s2459_s12, %s1643_s25  ;;  %s1647_s6 = sshll.u32 %s1750_s30, 4  ;;  %s1648_s6 = int_to_ptr.vmem [resolvable:$false] %s1647_s6 }
  0x57   : > { %474 = vmatprep.subr.bf16.mxu0 %v1566_v7  ;;  %1470 = vmatprep.subr.bf16.mxu1 %v1566_v7  ;;  %v1935_v39 = vpack.c.bf16 %v272_v36, %v271_v35  ;;  %v250_v42 = vld [vmem:[%s1901_s8 + $0x38] sm:$0xff]  ;;  %v273_v43 = vld [vmem:[%s1901_s8 + $0xf0] sm:$0xff]  ;;  %v1587_v45 = vld [vmem:[#allocation5 + $0x20] ss:$12 sps:$4 sm:$0xff]   ;;  %s1649_s7 = scalar_lea.vmem %s1648_s6, 24576  ;;  %p1650_p10 = scmp.lt.s32.totalorder %s2459_s12, %s1648_s6 }
  0x58   : > { %v274_v44 = vld [vmem:[%s1901_s8 + $0xf8] sm:$0xff]  ;;  %v278_v46 = vpack.c.bf16 %v250_v42, %v249_v41  ;;  %v1588_v48 = vld [vmem:[#allocation5 + $0x8] ss:$12 sps:$4 sm:$0xff]   ;;  %v251_v49 = vld [vmem:[%s1901_s8 + $0x40] sm:$0xff]  ;;  %p1645_p7 = pnand %p1644_p3, %p2620_p11  ;;  %p1651_p2 = scmp.lt.s32.totalorder %s1649_s7, %s1643_s25 }
  0x59   : > { %v1944_v47 = vpack.c.bf16 %v274_v44, %v273_v43  ;;  %v252_v50 = vld [vmem:[%s1901_s8 + $0x48] sm:$0xff]  ;;  %v253_v52 = vld [vmem:[%s1901_s8 + $0x50] sm:$0xff]  ;;  %v254_v53 = vld [vmem:[%s1901_s8 + $0x58] sm:$0xff] }
  0x5a   : > { %475 = vmatpush1.bf16.msra.mxu0 %v1568_v8  ;;  %1478 = vmatpush1.bf16.msra.mxu1 %v1568_v8  ;;  %v279_v51 = vpack.c.bf16 %v252_v50, %v251_v49  ;;  %v280_v54 = vpack.c.bf16 %v254_v53, %v253_v52  ;;  %v255_v55 = vld [vmem:[%s1901_s8 + $0x60] sm:$0xff]  ;;  %v256_v56 = vld [vmem:[%s1901_s8 + $0x68] sm:$0xff]  ;;  %v257_v58 = vld [vmem:[%s1901_s8 + $0x70] sm:$0xff]  ;;  %p1646_p12 = pneg %p1645_p7  ;;  %p1652_p13 = por %p1651_p2, %p1650_p10 }
  0x5b   : > { %476 = vmatprep.subr.bf16.mxu0 %v1569_v9  ;;  %1471 = vmatprep.subr.bf16.mxu1 %v1569_v9  ;;  %v281_v57 = vpack.c.bf16 %v256_v56, %v255_v55  ;;  %v258_v59 = vld [vmem:[%s1901_s8 + $0x78] sm:$0xff]  ;;  %v259_v61 = vld [vmem:[%s1901_s8 + $0x80] sm:$0xff]  ;;  %v260_v62 = vld [vmem:[%s1901_s8 + $0x88] sm:$0xff] }
  0x5c   : > { %v282_v60 = vpack.c.bf16 %v258_v59, %v257_v58  ;;  %v283_v63 = vpack.c.bf16 %v260_v62, %v259_v61  ;;  %v261_v1 = vld [vmem:[%s1901_s8 + $0x90] sm:$0xff]  ;;  %v262_v2 = vld [vmem:[%s1901_s8 + $0x98] sm:$0xff]  ;;  %v263_v3 = vld [vmem:[%s1901_s8 + $0xa0] sm:$0xff]  ;;  %p1653_p0 = pnand %p1652_p13, %p1646_p12 }
  0x5d   : > { %v264_v4 = vld [vmem:[%s1901_s8 + $0xa8] sm:$0xff]  ;;  %v284_v5 = vpack.c.bf16 %v262_v2, %v261_v1  ;;  %v265_v7 = vld [vmem:[%s1901_s8 + $0xb0] sm:$0xff]  ;;  %v266_v8 = vld [vmem:[%s1901_s8 + $0xb8] sm:$0xff] }
  0x5e   : > { %477 = vmatpush1.bf16.msra.mxu0 %v1571_v10  ;;  %1479 = vmatpush1.bf16.msra.mxu1 %v1571_v10  ;;  %v285_v6 = vpack.c.bf16 %v264_v4, %v263_v3  ;;  %v286_v9 = vpack.c.bf16 %v266_v8, %v265_v7  ;;  %v325_v10 = vlaneseq }
  0x5f   : > { %478 = vmatprep.subr.bf16.mxu0 %v1572_v11  ;;  %1472 = vmatprep.subr.bf16.mxu1 %v1572_v11 }
  0x60   : > { %v1975_v11 = vshrl.u32 %v325_v10, 7 }
  0x62   : > { %479 = vmatpush1.bf16.msra.mxu0 %v1574_v12  ;;  %1480 = vmatpush1.bf16.msra.mxu1 %v1574_v12  ;;  %v327_v12 = vsub.s32 0, %v1975_v11 }
  0x63   : > { %480 = vmatprep.subr.bf16.mxu0 %v1575_v13  ;;  %1473 = vmatprep.subr.bf16.mxu1 %v1575_v13  ;;  %v1981_v13 = vld [vmem:[%s2602_s2] sm:$0x7] }
  0x66   : > { %481 = vmatpush1.bf16.msra.mxu0 %v1577_v14  ;;  %1481 = vmatpush1.bf16.msra.mxu1 %v1577_v14  ;;  %v331_v14 = vsub.s32 1, %v1975_v11 }
  0x67   : > { %482 = vmatprep.subr.bf16.mxu0 %v1578_v15  ;;  %1474 = vmatprep.subr.bf16.mxu1 %v1578_v15 }
  0x68   : > { %v1989_v15 = vrot.slane %v1981_v13, %v331_v14 }
  0x6a   : > { %483 = vmatpush1.bf16.msra.mxu0 %v1580_v16  ;;  %1482 = vmatpush1.bf16.msra.mxu1 %v1580_v16 }
  0x6b   : > { %1419 = vmatprep.subr.bf16.mxu1 %v1581_v21 }
  0x6d   : > { %501 = vmatmul.mubr.bf16.vlgmr.msra.gmra.mxu0 %v275_v22  ;;  %621 = vmatmul.mubr.bf16.vlgmr.msra.gmra.mxu1 %v1917_v23 }
  0x6e   : > { %510 = vmatprep.mubr.bf16.mxu0 %v1749_v0  ;;  %1420 = vmatpush3.bf16.msra.mxu1 %v1581_v21 }
  0x6f   : > { %1421 = vmatprep.subr.bf16.mxu1 %v1582_v24  ;;  %630 = vmatprep.mubr.bf16.mxu1 %v1749_v0 }
  0x72   : > { %1422 = vmatpush3.bf16.msra.mxu1 %v1582_v24 }
  0x73   : > { %1423 = vmatprep.subr.bf16.mxu1 %v1583_v29 }
  0x75   : > { %511 = vmatmul.mubr.bf16.gmra.mxu0 %v276_v30  ;;  %631 = vmatmul.mubr.bf16.gmra.mxu1 %v1926_v31 }
  0x76   : > { %520 = vmatprep.mubr.bf16.mxu0 %v1749_v0  ;;  %1424 = vmatpush3.bf16.msra.mxu1 %v1583_v29 }
  0x77   : > { %1425 = vmatprep.subr.bf16.mxu1 %v1584_v32  ;;  %640 = vmatprep.mubr.bf16.mxu1 %v1749_v0 }
  0x7a   : > { %1426 = vmatpush3.bf16.msra.mxu1 %v1584_v32 }
  0x7b   : > { %1427 = vmatprep.subr.bf16.mxu1 %v1585_v37 }
  0x7d   : > { %521 = vmatmul.mubr.bf16.gmra.mxu0 %v277_v38  ;;  %641 = vmatmul.mubr.bf16.gmra.mxu1 %v1935_v39 }
  0x7e   : > { %530 = vmatprep.mubr.bf16.mxu0 %v1749_v0  ;;  %1428 = vmatpush3.bf16.msra.mxu1 %v1585_v37 }
  0x7f   : > { %1429 = vmatprep.subr.bf16.mxu1 %v1586_v40  ;;  %650 = vmatprep.mubr.bf16.mxu1 %v1749_v0 }
  0x82   : > { %1430 = vmatpush3.bf16.msra.mxu1 %v1586_v40 }
  0x83   : > { %1431 = vmatprep.subr.bf16.mxu1 %v1587_v45 }
  0x85   : > { %531 = vmatmul.mubr.bf16.gmra.mxu0 %v278_v46  ;;  %651 = vmatmul.mubr.bf16.gmra.mxu1 %v1944_v47 }
  0x86   : > { %540 = vmatprep.mubr.bf16.mxu0 %v1749_v0  ;;  %1432 = vmatpush3.bf16.msra.mxu1 %v1587_v45 }
  0x87   : > { %1433 = vmatprep.subr.bf16.mxu1 %v1588_v48  ;;  %1435 = vmatprep.mubr.bf16.mxu1 %v275_v22 }
  0x8a   : > { %1434 = vmatpush3.bf16.msra.mxu1 %v1588_v48 }
  0x8d   : > { %541 = vmatmul.mubr.bf16.gmra.mxu0 %v279_v51  ;;  %1436 = vmatmul.mubr.bf16.vlgmr.msra.gmra.mxu1 %v276_v30 }
  0x8e   : > { %550 = vmatprep.mubr.bf16.mxu0 %v1749_v0  ;;  %1439 = vmatprep.mubr.bf16.mxu1 %v277_v38 }
  0x95   : > { %551 = vmatmul.mubr.bf16.gmra.mxu0 %v280_v54  ;;  %1440 = vmatmul.mubr.bf16.gmra.mxu1 %v278_v46 }
  0x96   : > { %560 = vmatprep.mubr.bf16.mxu0 %v1749_v0  ;;  %1443 = vmatprep.mubr.bf16.mxu1 %v279_v51 }
  0x9d   : > { %561 = vmatmul.mubr.bf16.gmra.mxu0 %v281_v57  ;;  %1444 = vmatmul.mubr.bf16.gmra.mxu1 %v280_v54 }
  0x9e   : > { %570 = vmatprep.mubr.bf16.mxu0 %v1749_v0  ;;  %1447 = vmatprep.mubr.bf16.mxu1 %v281_v57 }
  0xa5   : > { %571 = vmatmul.mubr.bf16.gmra.mxu0 %v282_v60  ;;  %1448 = vmatmul.mubr.bf16.gmra.mxu1 %v282_v60 }
  0xa6   : > { %580 = vmatprep.mubr.bf16.mxu0 %v1749_v0  ;;  %1451 = vmatprep.mubr.bf16.mxu1 %v283_v63 }
  0xad   : > { %581 = vmatmul.mubr.bf16.gmra.mxu0 %v283_v63  ;;  %1452 = vmatmul.mubr.bf16.gmra.mxu1 %v284_v5 }
  0xae   : > { %590 = vmatprep.mubr.bf16.mxu0 %v1749_v0  ;;  %1455 = vmatprep.mubr.bf16.mxu1 %v285_v6 }
  0xb5   : > { %591 = vmatmul.mubr.bf16.gmra.mxu0 %v284_v5  ;;  %1456 = vmatmul.mubr.bf16.gmra.mxu1 %v286_v9  ;;  %v335_v5 = vsub.s32 2, %v1975_v11 }
  0xb6   : > { %600 = vmatprep.mubr.bf16.mxu0 %v1749_v0  ;;  %1459 = vmatprep.mubr.bf16.mxu1 %v1917_v23 }
  0xbd   : > { %601 = vmatmul.mubr.bf16.gmra.mxu0 %v285_v6  ;;  %1460 = vmatmul.mubr.bf16.gmra.mxu1 %v1926_v31 }
  0xbe   : > { %610 = vmatprep.mubr.bf16.mxu0 %v1749_v0  ;;  %1463 = vmatprep.mubr.bf16.mxu1 %v1935_v39  ;;  %v1986_v0 = vrot.slane %v1981_v13, %v327_v12 }
  0xc5   : > { %611 = vmatmul.mubr.bf16.gmra.mxu0 %v286_v9  ;;  %1464 = vmatmul.mubr.bf16.gmra.mxu1 %v1944_v47 }
 0x12d   : > { %v502_v16 = vpop.f32.mrf.mxu0  ;;  %v622_v17 = vpop.f32.mrf.mxu1 }
 0x12e   : > { %v503_v18 = vadd.f32 %v502_v16, %v1986_v0  ;;  %v1993_v19 = vadd.f32 %v622_v17, %v1986_v0  ;;  %v2099_v16 = vrot.slane %v1981_v13, %v335_v5 }
 0x12f   : > { %v504_v20 = vpop.f32.mrf.mxu0  ;;  %v624_v21 = vpop.f32.mrf.mxu1 }
 0x130   : > { %822 = vst [vmem:[%s1997_s26] sm:$0xff] %v503_v18  ;;  %v505_v22 = vadd.f32 %v504_v20, %v1989_v15  ;;  %918 = vxpose.xlu0.b32.start [1/16] %v503_v18, 128  ;;  %894 = vst [vmem:[%s1997_s26 + $0x240] sm:$0xff] %v1993_v19  ;;  %v2004_v23 = vadd.f32 %v624_v21, %v1989_v15 }
 0x131   : > { %v506_v24 = vpop.f32.mrf.mxu0  ;;  %v626_v25 = vpop.f32.mrf.mxu1 }
 0x132   : > { %823 = vst [vmem:[%s1997_s26 + $0x8] sm:$0xff] %v505_v22  ;;  %v507_v26 = vadd.f32 %v506_v24, %v1986_v0  ;;  %950 = vxpose.xlu1.b32.start [1/16] %v505_v22, 128  ;;  %895 = vst [vmem:[%s1997_s26 + $0x248] sm:$0xff] %v2004_v23  ;;  %v2011_v27 = vadd.f32 %v626_v25, %v1986_v0 }
 0x133   : > { %v508_v28 = vpop.f32.mrf.mxu0  ;;  %v628_v29 = vpop.f32.mrf.mxu1 }
 0x134   : > { %825 = vst [vmem:[%s1997_s26 + $0x18] sm:$0xff] %v507_v26  ;;  %v509_v30 = vadd.f32 %v508_v28, %v1989_v15  ;;  %919 = vxpose.xlu0.b32.cont [2/16] %v507_v26, 128  ;;  %897 = vst [vmem:[%s1997_s26 + $0x258] sm:$0xff] %v2011_v27  ;;  %v2018_v31 = vadd.f32 %v628_v29, %v1989_v15 }
 0x135   : > { %v512_v32 = vpop.f32.mrf.mxu0  ;;  %v632_v33 = vpop.f32.mrf.mxu1 }
 0x136   : > { %826 = vst [vmem:[%s1997_s26 + $0x20] sm:$0xff] %v509_v30  ;;  %v513_v34 = vadd.f32 %v512_v32, %v1986_v0  ;;  %951 = vxpose.xlu1.b32.cont [2/16] %v509_v30, 128  ;;  %898 = vst [vmem:[%s1997_s26 + $0x260] sm:$0xff] %v2018_v31  ;;  %v2025_v35 = vadd.f32 %v632_v33, %v1986_v0 }
 0x137   : > { %v514_v36 = vpop.f32.mrf.mxu0  ;;  %v634_v37 = vpop.f32.mrf.mxu1 }
 0x138   : > { %828 = vst [vmem:[%s1997_s26 + $0x30] sm:$0xff] %v513_v34  ;;  %v515_v38 = vadd.f32 %v514_v36, %v1989_v15  ;;  %920 = vxpose.xlu0.b32.cont [3/16] %v513_v34, 128  ;;  %900 = vst [vmem:[%s1997_s26 + $0x270] sm:$0xff] %v2025_v35  ;;  %v2032_v39 = vadd.f32 %v634_v37, %v1989_v15 }
 0x139   : > { %v516_v40 = vpop.f32.mrf.mxu0  ;;  %v636_v41 = vpop.f32.mrf.mxu1 }
 0x13a   : > { %829 = vst [vmem:[%s1997_s26 + $0x38] sm:$0xff] %v515_v38  ;;  %v517_v42 = vadd.f32 %v516_v40, %v1986_v0  ;;  %952 = vxpose.xlu1.b32.cont [3/16] %v515_v38, 128  ;;  %901 = vst [vmem:[%s1997_s26 + $0x278] sm:$0xff] %v2032_v39  ;;  %v2039_v43 = vadd.f32 %v636_v41, %v1986_v0 }
 0x13b   : > { %v518_v44 = vpop.f32.mrf.mxu0  ;;  %v638_v45 = vpop.f32.mrf.mxu1 }
 0x13c   : > { %831 = vst [vmem:[%s1997_s26 + $0x48] sm:$0xff] %v517_v42  ;;  %v519_v46 = vadd.f32 %v518_v44, %v1989_v15  ;;  %921 = vxpose.xlu0.b32.cont [4/16] %v517_v42, 128  ;;  %903 = vst [vmem:[%s1997_s26 + $0x288] sm:$0xff] %v2039_v43  ;;  %v2046_v47 = vadd.f32 %v638_v45, %v1989_v15 }
 0x13d   : > { %v522_v48 = vpop.f32.mrf.mxu0  ;;  %v642_v49 = vpop.f32.mrf.mxu1 }
 0x13e   : > { %832 = vst [vmem:[%s1997_s26 + $0x50] sm:$0xff] %v519_v46  ;;  %v523_v50 = vadd.f32 %v522_v48, %v1986_v0  ;;  %953 = vxpose.xlu1.b32.cont [4/16] %v519_v46, 128  ;;  %904 = vst [vmem:[%s1997_s26 + $0x290] sm:$0xff] %v2046_v47  ;;  %v2053_v51 = vadd.f32 %v642_v49, %v1986_v0 }
 0x13f   : > { %v524_v52 = vpop.f32.mrf.mxu0  ;;  %v644_v53 = vpop.f32.mrf.mxu1 }
 0x140   : > { %834 = vst [vmem:[%s1997_s26 + $0x60] sm:$0xff] %v523_v50  ;;  %v525_v54 = vadd.f32 %v524_v52, %v1989_v15  ;;  %922 = vxpose.xlu0.b32.cont [5/16] %v523_v50, 128  ;;  %906 = vst [vmem:[%s1997_s26 + $0x2a0] sm:$0xff] %v2053_v51  ;;  %v2060_v55 = vadd.f32 %v644_v53, %v1989_v15 }
 0x141   : > { %v526_v56 = vpop.f32.mrf.mxu0  ;;  %v646_v57 = vpop.f32.mrf.mxu1 }
 0x142   : > { %835 = vst [vmem:[%s1997_s26 + $0x68] sm:$0xff] %v525_v54  ;;  %v527_v58 = vadd.f32 %v526_v56, %v1986_v0  ;;  %954 = vxpose.xlu1.b32.cont [5/16] %v525_v54, 128  ;;  %907 = vst [vmem:[%s1997_s26 + $0x2a8] sm:$0xff] %v2060_v55  ;;  %v2067_v59 = vadd.f32 %v646_v57, %v1986_v0 }
 0x143   : > { %v528_v60 = vpop.f32.mrf.mxu0  ;;  %v648_v61 = vpop.f32.mrf.mxu1 }
 0x144   : > { %837 = vst [vmem:[%s1997_s26 + $0x78] sm:$0xff] %v527_v58  ;;  %v529_v62 = vadd.f32 %v528_v60, %v1989_v15  ;;  %923 = vxpose.xlu0.b32.cont [6/16] %v527_v58, 128  ;;  %909 = vst [vmem:[%s1997_s26 + $0x2b8] sm:$0xff] %v2067_v59  ;;  %v2074_v63 = vadd.f32 %v648_v61, %v1989_v15 }
 0x145   : > { %v532_v1 = vpop.f32.mrf.mxu0  ;;  %v652_v2 = vpop.f32.mrf.mxu1 }
 0x146   : > { %838 = vst [vmem:[%s1997_s26 + $0x80] sm:$0xff] %v529_v62  ;;  %v533_v3 = vadd.f32 %v532_v1, %v1986_v0  ;;  %955 = vxpose.xlu1.b32.cont [6/16] %v529_v62, 128  ;;  %910 = vst [vmem:[%s1997_s26 + $0x2c0] sm:$0xff] %v2074_v63  ;;  %v2081_v4 = vadd.f32 %v652_v2, %v1986_v0 }
 0x147   : > { %v534_v6 = vpop.f32.mrf.mxu0  ;;  %v654_v7 = vpop.f32.mrf.mxu1 }
 0x148   : > { %840 = vst [vmem:[%s1997_s26 + $0x90] sm:$0xff] %v533_v3  ;;  %v535_v8 = vadd.f32 %v534_v6, %v1989_v15  ;;  %924 = vxpose.xlu0.b32.cont [7/16] %v533_v3, 128  ;;  %912 = vst [vmem:[%s1997_s26 + $0x2d0] sm:$0xff] %v2081_v4  ;;  %v2089_v9 = vadd.f32 %v654_v7, %v1989_v15 }
 0x149   : > { %v536_v10 = vpop.f32.mrf.mxu0  ;;  %v656_v12 = vpop.f32.mrf.mxu1 }
 0x14a   : > { %841 = vst [vmem:[%s1997_s26 + $0x98] sm:$0xff] %v535_v8  ;;  %v537_v14 = vadd.f32 %v536_v10, %v1986_v0  ;;  %956 = vxpose.xlu1.b32.cont [7/16] %v535_v8, 128  ;;  %913 = vst [vmem:[%s1997_s26 + $0x2d8] sm:$0xff] %v2089_v9  ;;  %v2096_v11 = vadd.f32 %v656_v12, %v1986_v0 }
 0x14b   : > { %v538_v17 = vpop.f32.mrf.mxu0  ;;  %v658_v18 = vpop.f32.mrf.mxu1 }
 0x14c   : > { %843 = vst [vmem:[%s1997_s26 + $0xa8] sm:$0xff] %v537_v14  ;;  %v539_v20 = vadd.f32 %v538_v17, %v1989_v15  ;;  %925 = vxpose.xlu0.b32.cont [8/16] %v537_v14, 128  ;;  %915 = vst [vmem:[%s1997_s26 + $0x2e8] sm:$0xff] %v2096_v11  ;;  %v2106_v21 = vadd.f32 %v658_v18, %v1989_v15 }
 0x14d   : > { %v542_v22 = vpop.f32.mrf.mxu0  ;;  %v1437_v24 = vpop.f32.mrf.mxu1 }
 0x14e   : > { %844 = vst [vmem:[%s1997_s26 + $0xb0] sm:$0xff] %v539_v20  ;;  %v543_v13 = vadd.f32 %v542_v22, %v1986_v0  ;;  %957 = vxpose.xlu1.b32.cont [8/16] %v539_v20, 128  ;;  %916 = vst [vmem:[%s1997_s26 + $0x2f0] sm:$0xff] %v2106_v21  ;;  %v2113_v25 = vadd.f32 %v1437_v24, %v2099_v16 }
 0x14f   : > { %v544_v26 = vpop.f32.mrf.mxu0  ;;  %v695_v28 = vpop.f32.mrf.mxu1 }
 0x150   : > { %846 = vst [vmem:[%s1997_s26 + $0xc0] sm:$0xff] %v543_v13  ;;  %v545_v29 = vadd.f32 %v544_v26, %v1989_v15  ;;  %926 = vxpose.xlu0.b32.cont [9/16] %v543_v13, 128  ;;  %830 = vst [vmem:[%s1997_s26 + $0x40] sm:$0xff] %v2113_v25  ;;  %v2120_v30 = vadd.f32 %v695_v28, %v2099_v16 }
 0x151   : > { %v546_v32 = vpop.f32.mrf.mxu0  ;;  %v1438_v33 = vpop.f32.mrf.mxu1 }
 0x152   : > { %847 = vst [vmem:[%s1997_s26 + $0xc8] sm:$0xff] %v545_v29  ;;  %v547_v34 = vadd.f32 %v546_v32, %v1986_v0  ;;  %958 = vxpose.xlu1.b32.cont [9/16] %v545_v29, 128  ;;  %824 = vst [vmem:[%s1997_s26 + $0x10] sm:$0xff] %v2120_v30  ;;  %v2127_v36 = vadd.f32 %v1438_v33, %v2099_v16 }
 0x153   : > { %v548_v37 = vpop.f32.mrf.mxu0  ;;  %v698_v38 = vpop.f32.mrf.mxu1 }
 0x154   : > { %849 = vst [vmem:[%s1997_s26 + $0xd8] sm:$0xff] %v547_v34  ;;  %v549_v40 = vadd.f32 %v548_v37, %v1989_v15  ;;  %927 = vxpose.xlu0.b32.cont [10/16] %v547_v34, 128  ;;  %833 = vst [vmem:[%s1997_s26 + $0x58] sm:$0xff] %v2127_v36  ;;  %v2134_v41 = vadd.f32 %v698_v38, %v2099_v16 }
 0x155   : > { %v552_v42 = vpop.f32.mrf.mxu0  ;;  %v1441_v44 = vpop.f32.mrf.mxu1 }
 0x156   : > { %850 = vst [vmem:[%s1997_s26 + $0xe0] sm:$0xff] %v549_v40  ;;  %v553_v45 = vadd.f32 %v552_v42, %v1986_v0  ;;  %959 = vxpose.xlu1.b32.cont [10/16] %v549_v40, 128  ;;  %827 = vst [vmem:[%s1997_s26 + $0x28] sm:$0xff] %v2134_v41  ;;  %v2141_v46 = vadd.f32 %v1441_v44, %v2099_v16 }
 0x157   : > { %v554_v48 = vpop.f32.mrf.mxu0  ;;  %v711_v49 = vpop.f32.mrf.mxu1 }
 0x158   : > { %852 = vst [vmem:[%s1997_s26 + $0xf0] sm:$0xff] %v553_v45  ;;  %v555_v50 = vadd.f32 %v554_v48, %v1989_v15  ;;  %928 = vxpose.xlu0.b32.cont [11/16] %v553_v45, 128  ;;  %842 = vst [vmem:[%s1997_s26 + $0xa0] sm:$0xff] %v2141_v46  ;;  %v2148_v52 = vadd.f32 %v711_v49, %v2099_v16 }
 0x159   : > { %v556_v53 = vpop.f32.mrf.mxu0  ;;  %v1442_v54 = vpop.f32.mrf.mxu1 }
 0x15a   : > { %853 = vst [vmem:[%s1997_s26 + $0xf8] sm:$0xff] %v555_v50  ;;  %v557_v56 = vadd.f32 %v556_v53, %v1986_v0  ;;  %960 = vxpose.xlu1.b32.cont [11/16] %v555_v50, 128  ;;  %836 = vst [vmem:[%s1997_s26 + $0x70] sm:$0xff] %v2148_v52  ;;  %v2155_v57 = vadd.f32 %v1442_v54, %v2099_v16 }
 0x15b   : > { %v558_v58 = vpop.f32.mrf.mxu0  ;;  %v714_v60 = vpop.f32.mrf.mxu1 }
 0x15c   : > { %855 = vst [vmem:[%s1997_s26 + $0x108] sm:$0xff] %v557_v56  ;;  %v559_v61 = vadd.f32 %v558_v58, %v1989_v15  ;;  %929 = vxpose.xlu0.b32.cont [12/16] %v557_v56, 128  ;;  %845 = vst [vmem:[%s1997_s26 + $0xb8] sm:$0xff] %v2155_v57  ;;  %v2162_v62 = vadd.f32 %v714_v60, %v2099_v16 }
 0x15d   : > { %v562_v1 = vpop.f32.mrf.mxu0  ;;  %v1445_v2 = vpop.f32.mrf.mxu1 }
 0x15e   : > { %856 = vst [vmem:[%s1997_s26 + $0x110] sm:$0xff] %v559_v61  ;;  %v563_v3 = vadd.f32 %v562_v1, %v1986_v0  ;;  %961 = vxpose.xlu1.b32.cont [12/16] %v559_v61, 128  ;;  %839 = vst [vmem:[%s1997_s26 + $0x88] sm:$0xff] %v2162_v62  ;;  %v2169_v5 = vadd.f32 %v1445_v2, %v2099_v16 }
 0x15f   : > { %v564_v6 = vpop.f32.mrf.mxu0  ;;  %v727_v7 = vpop.f32.mrf.mxu1 }
 0x160   : > { %858 = vst [vmem:[%s1997_s26 + $0x120] sm:$0xff] %v563_v3  ;;  %v565_v8 = vadd.f32 %v564_v6, %v1989_v15  ;;  %930 = vxpose.xlu0.b32.cont [13/16] %v563_v3, 128  ;;  %854 = vst [vmem:[%s1997_s26 + $0x100] sm:$0xff] %v2169_v5  ;;  %v2176_v10 = vadd.f32 %v727_v7, %v2099_v16 }
 0x161   : > { %v566_v12 = vpop.f32.mrf.mxu0  ;;  %v1446_v14 = vpop.f32.mrf.mxu1 }
 0x162   : > { %859 = vst [vmem:[%s1997_s26 + $0x128] sm:$0xff] %v565_v8  ;;  %v567_v17 = vadd.f32 %v566_v12, %v1986_v0  ;;  %962 = vxpose.xlu1.b32.cont [13/16] %v565_v8, 128  ;;  %848 = vst [vmem:[%s1997_s26 + $0xd0] sm:$0xff] %v2176_v10  ;;  %v2183_v18 = vadd.f32 %v1446_v14, %v2099_v16 }
 0x163   : > { %v568_v20 = vpop.f32.mrf.mxu0  ;;  %v730_v22 = vpop.f32.mrf.mxu1 }
 0x164   : > { %861 = vst [vmem:[%s1997_s26 + $0x138] sm:$0xff] %v567_v17  ;;  %v569_v24 = vadd.f32 %v568_v20, %v1989_v15  ;;  %931 = vxpose.xlu0.b32.cont [14/16] %v567_v17, 128  ;;  %857 = vst [vmem:[%s1997_s26 + $0x118] sm:$0xff] %v2183_v18  ;;  %v2190_v13 = vadd.f32 %v730_v22, %v2099_v16 }
 0x165   : > { %v572_v26 = vpop.f32.mrf.mxu0  ;;  %v1449_v28 = vpop.f32.mrf.mxu1 }
 0x166   : > { %862 = vst [vmem:[%s1997_s26 + $0x140] sm:$0xff] %v569_v24  ;;  %v573_v29 = vadd.f32 %v572_v26, %v1986_v0  ;;  %963 = vxpose.xlu1.b32.cont [14/16] %v569_v24, 128  ;;  %851 = vst [vmem:[%s1997_s26 + $0xe8] sm:$0xff] %v2190_v13  ;;  %v2197_v32 = vadd.f32 %v1449_v28, %v2099_v16 }
 0x167   : > { %v574_v33 = vpop.f32.mrf.mxu0  ;;  %v743_v34 = vpop.f32.mrf.mxu1 }
 0x168   : > { %864 = vst [vmem:[%s1997_s26 + $0x150] sm:$0xff] %v573_v29  ;;  %v575_v37 = vadd.f32 %v574_v33, %v1989_v15  ;;  %932 = vxpose.xlu0.b32.cont [15/16] %v573_v29, 128  ;;  %866 = vst [vmem:[%s1997_s26 + $0x160] sm:$0xff] %v2197_v32  ;;  %v2204_v38 = vadd.f32 %v743_v34, %v2099_v16 }
 0x169   : > { %v576_v40 = vpop.f32.mrf.mxu0  ;;  %v1450_v42 = vpop.f32.mrf.mxu1 }
 0x16a   : > { %865 = vst [vmem:[%s1997_s26 + $0x158] sm:$0xff] %v575_v37  ;;  %v577_v44 = vadd.f32 %v576_v40, %v1986_v0  ;;  %964 = vxpose.xlu1.b32.cont [15/16] %v575_v37, 128  ;;  %860 = vst [vmem:[%s1997_s26 + $0x130] sm:$0xff] %v2204_v38  ;;  %v2211_v45 = vadd.f32 %v1450_v42, %v2099_v16 }
 0x16b   : > { %v578_v48 = vpop.f32.mrf.mxu0  ;;  %v746_v49 = vpop.f32.mrf.mxu1 }
 0x16c   : > { %867 = vst [vmem:[%s1997_s26 + $0x168] sm:$0xff] %v577_v44  ;;  %v579_v50 = vadd.f32 %v578_v48, %v1989_v15  ;;  %933 = vxpose.xlu0.b32.end [16/16] %v577_v44, 128  ;;  %869 = vst [vmem:[%s1997_s26 + $0x178] sm:$0xff] %v2211_v45  ;;  %v2218_v53 = vadd.f32 %v746_v49, %v2099_v16 }
 0x16d   : > { %v582_v54 = vpop.f32.mrf.mxu0  ;;  %v1453_v56 = vpop.f32.mrf.mxu1 }
 0x16e   : > { %868 = vst [vmem:[%s1997_s26 + $0x170] sm:$0xff] %v579_v50  ;;  %v583_v58 = vadd.f32 %v582_v54, %v1986_v0  ;;  %965 = vxpose.xlu1.b32.end [16/16] %v579_v50, 128  ;;  %863 = vst [vmem:[%s1997_s26 + $0x148] sm:$0xff] %v2218_v53  ;;  %v2225_v60 = vadd.f32 %v1453_v56, %v2099_v16 }
 0x16f   : > { %v584_v61 = vpop.f32.mrf.mxu0  ;;  %v759_v1 = vpop.f32.mrf.mxu1 }
 0x170   : > { %870 = vst [vmem:[%s1997_s26 + $0x180] sm:$0xff] %v583_v58  ;;  %v2229_v2 = vadd.f32 %v584_v61, %v1989_v15  ;;  %982 = vxpose.xlu0.b32.start [1/16] %v2120_v30, 128  ;;  %878 = vst [vmem:[%s1997_s26 + $0x1c0] sm:$0xff] %v2225_v60  ;;  %v2235_v3 = vadd.f32 %v759_v1, %v2099_v16 }
 0x171   : > { %v586_v6 = vpop.f32.mrf.mxu0  ;;  %v1454_v7 = vpop.f32.mrf.mxu1 }
 0x172   : > { %871 = vst [vmem:[%s1997_s26 + $0x188] sm:$0xff] %v2229_v2  ;;  %v587_v8 = vadd.f32 %v586_v6, %v1986_v0  ;;  %1014 = vxpose.xlu1.b32.start [1/16] %v583_v58, 128  ;;  %872 = vst [vmem:[%s1997_s26 + $0x190] sm:$0xff] %v2235_v3  ;;  %v2243_v12 = vadd.f32 %v1454_v7, %v2099_v16 }
 0x173   : > { %v588_v30 = vpop.f32.mrf.mxu0  ;;  %v762_v14 = vpop.f32.mrf.mxu1 }
 0x174   : > { %873 = vst [vmem:[%s1997_s26 + $0x198] sm:$0xff] %v587_v8  ;;  %v2247_v17 = vadd.f32 %v588_v30, %v1989_v15  ;;  %983 = vxpose.xlu0.b32.cont [2/16] %v2134_v41, 128  ;;  %881 = vst [vmem:[%s1997_s26 + $0x1d8] sm:$0xff] %v2243_v12  ;;  %v2253_v20 = vadd.f32 %v762_v14, %v2099_v16 }
 0x175   : > { %v592_v22 = vpop.f32.mrf.mxu0  ;;  %v1457_v24 = vpop.f32.mrf.mxu1 }
 0x176   : > { %874 = vst [vmem:[%s1997_s26 + $0x1a0] sm:$0xff] %v2247_v17  ;;  %v593_v26 = vadd.f32 %v592_v22, %v1986_v0  ;;  %1015 = vxpose.xlu1.b32.cont [2/16] %v587_v8, 128  ;;  %875 = vst [vmem:[%s1997_s26 + $0x1a8] sm:$0xff] %v2253_v20  ;;  %v2261_v28 = vadd.f32 %v1457_v24, %v2099_v16 }
 0x177   : > { %v594_v41 = vpop.f32.mrf.mxu0  ;;  %v775_v29 = vpop.f32.mrf.mxu1 }
 0x178   : > { %876 = vst [vmem:[%s1997_s26 + $0x1b0] sm:$0xff] %v593_v26  ;;  %v2265_v33 = vadd.f32 %v594_v41, %v1989_v15  ;;  %984 = vxpose.xlu0.b32.cont [3/16] %v2113_v25, 128  ;;  %890 = vst [vmem:[%s1997_s26 + $0x220] sm:$0xff] %v2261_v28  ;;  %v2271_v34 = vadd.f32 %v775_v29, %v2099_v16 }
 0x179   : > { %v596_v37 = vpop.f32.mrf.mxu0  ;;  %v1458_v40 = vpop.f32.mrf.mxu1 }
 0x17a   : > { %877 = vst [vmem:[%s1997_s26 + $0x1b8] sm:$0xff] %v2265_v33  ;;  %v597_v42 = vadd.f32 %v596_v37, %v1986_v0  ;;  %1016 = vxpose.xlu1.b32.cont [3/16] %v593_v26, 128  ;;  %884 = vst [vmem:[%s1997_s26 + $0x1f0] sm:$0xff] %v2271_v34  ;;  %v2279_v44 = vadd.f32 %v1458_v40, %v2099_v16 }
 0x17b   : > { %v598_v25 = vpop.f32.mrf.mxu0  ;;  %v778_v48 = vpop.f32.mrf.mxu1 }
 0x17c   : > { %879 = vst [vmem:[%s1997_s26 + $0x1c8] sm:$0xff] %v597_v42  ;;  %v2283_v49 = vadd.f32 %v598_v25, %v1989_v15  ;;  %985 = vxpose.xlu0.b32.cont [4/16] %v2127_v36, 128  ;;  %893 = vst [vmem:[%s1997_s26 + $0x238] sm:$0xff] %v2279_v44  ;;  %v2289_v50 = vadd.f32 %v778_v48, %v2099_v16 }
 0x17d   : > { %v602_v54 = vpop.f32.mrf.mxu0  ;;  %v1461_v56 = vpop.f32.mrf.mxu1 }
 0x17e   : > { %880 = vst [vmem:[%s1997_s26 + $0x1d0] sm:$0xff] %v2283_v49  ;;  %v603_v58 = vadd.f32 %v602_v54, %v1986_v0  ;;  %1017 = vxpose.xlu1.b32.cont [4/16] %v597_v42, 128  ;;  %887 = vst [vmem:[%s1997_s26 + $0x208] sm:$0xff] %v2289_v50  ;;  %v2297_v61 = vadd.f32 %v1461_v56, %v2099_v16 }
 0x17f   : > { %v604_v36 = vpop.f32.mrf.mxu0  ;;  %v791_v1 = vpop.f32.mrf.mxu1 }
 0x180   : > { %882 = vst [vmem:[%s1997_s26 + $0x1e0] sm:$0xff] %v603_v58  ;;  %v2301_v6 = vadd.f32 %v604_v36, %v1989_v15  ;;  %986 = vxpose.xlu0.b32.cont [5/16] %v2148_v52, 128  ;;  %902 = vst [vmem:[%s1997_s26 + $0x280] sm:$0xff] %v2297_v61  ;;  %v2307_v7 = vadd.f32 %v791_v1, %v2099_v16 }
 0x181   : > { %v606_v8 = vpop.f32.mrf.mxu0  ;;  %v1462_v30 = vpop.f32.mrf.mxu1 }
 0x182   : > { %883 = vst [vmem:[%s1997_s26 + $0x1e8] sm:$0xff] %v2301_v6  ;;  %v607_v14 = vadd.f32 %v606_v8, %v1986_v0  ;;  %1018 = vxpose.xlu1.b32.cont [5/16] %v603_v58, 128  ;;  %896 = vst [vmem:[%s1997_s26 + $0x250] sm:$0xff] %v2307_v7  ;;  %v2315_v22 = vadd.f32 %v1462_v30, %v2099_v16 }
 0x183   : > { %v608_v52 = vpop.f32.mrf.mxu0  ;;  %v794_v24 = vpop.f32.mrf.mxu1 }
 0x184   : > { %885 = vst [vmem:[%s1997_s26 + $0x1f8] sm:$0xff] %v607_v14  ;;  %v2319_v26 = vadd.f32 %v608_v52, %v1989_v15  ;;  %987 = vxpose.xlu0.b32.cont [6/16] %v2162_v62, 128  ;;  %905 = vst [vmem:[%s1997_s26 + $0x298] sm:$0xff] %v2315_v22  ;;  %v2325_v41 = vadd.f32 %v794_v24, %v2099_v16 }
 0x185   : > { %v612_v29 = vpop.f32.mrf.mxu0  ;;  %v1465_v37 = vpop.f32.mrf.mxu1 }
 0x186   : > { %886 = vst [vmem:[%s1997_s26 + $0x200] sm:$0xff] %v2319_v26  ;;  %v613_v40 = vadd.f32 %v612_v29, %v1986_v0  ;;  %1019 = vxpose.xlu1.b32.cont [6/16] %v607_v14, 128  ;;  %899 = vst [vmem:[%s1997_s26 + $0x268] sm:$0xff] %v2325_v41  ;;  %v2333_v42 = vadd.f32 %v1465_v37, %v2099_v16 }
 0x187   : > { %v614_v62 = vpop.f32.mrf.mxu0  ;;  %v807_v25 = vpop.f32.mrf.mxu1 }
 0x188   : > { %888 = vst [vmem:[%s1997_s26 + $0x210] sm:$0xff] %v613_v40  ;;  %v2337_v48 = vadd.f32 %v614_v62, %v1989_v15  ;;  %988 = vxpose.xlu0.b32.cont [7/16] %v2141_v46, 128  ;;  %914 = vst [vmem:[%s1997_s26 + $0x2e0] sm:$0xff] %v2333_v42  ;;  %v2343_v54 = vadd.f32 %v807_v25, %v2099_v16 }
 0x189   : > { %v616_v56 = vpop.f32.mrf.mxu0  ;;  %v1466_v58 = vpop.f32.mrf.mxu1 }
 0x18a   : > { %889 = vst [vmem:[%s1997_s26 + $0x218] sm:$0xff] %v2337_v48  ;;  %v617_v36 = vadd.f32 %v616_v56, %v1986_v0  ;;  %1020 = vxpose.xlu1.b32.cont [7/16] %v613_v40, 128  ;;  %908 = vst [vmem:[%s1997_s26 + $0x2b0] sm:$0xff] %v2343_v54  ;;  %v2351_v1 = vadd.f32 %v1466_v58, %v2099_v16 }
 0x18b   : > { %v618_v46 = vpop.f32.mrf.mxu0  ;;  %v810_v8 = vpop.f32.mrf.mxu1 }
 0x18c   : > { %891 = vst [vmem:[%s1997_s26 + $0x228] sm:$0xff] %v617_v36  ;;  %v2355_v30 = vadd.f32 %v618_v46, %v1989_v15  ;;  %989 = vxpose.xlu0.b32.cont [8/16] %v2155_v57, 128  ;;  %917 = vst [vmem:[%s1997_s26 + $0x2f8] sm:$0xff] %v2351_v1  ;;  %v2361_v14 = vadd.f32 %v810_v8, %v2099_v16 }
 0x18e   : > { %892 = vst [vmem:[%s1997_s26 + $0x230] sm:$0xff] %v2355_v30  ;;  %1021 = vxpose.xlu1.b32.cont [8/16] %v617_v36, 128  ;;  %911 = vst [vmem:[%s1997_s26 + $0x2c8] sm:$0xff] %v2361_v14 }
 0x190   : > { %990 = vxpose.xlu0.b32.cont [9/16] %v2176_v10, 128 }
 0x192   : > { %1022 = vxpose.xlu1.b32.cont [9/16] %v1993_v19, 128 }
 0x194   : > { %991 = vxpose.xlu0.b32.cont [10/16] %v2190_v13, 128 }
 0x196   : > { %1023 = vxpose.xlu1.b32.cont [10/16] %v2011_v27, 128 }
 0x198   : > { %992 = vxpose.xlu0.b32.cont [11/16] %v2169_v5, 128 }
 0x19a   : > { %1024 = vxpose.xlu1.b32.cont [11/16] %v2025_v35, 128 }
 0x19c   : > { %993 = vxpose.xlu0.b32.cont [12/16] %v2183_v18, 128 }
 0x19e   : > { %1025 = vxpose.xlu1.b32.cont [12/16] %v2039_v43, 128 }
 0x1a0   : > { %994 = vxpose.xlu0.b32.cont [13/16] %v2204_v38, 128 }
 0x1a2   : > { %1026 = vxpose.xlu1.b32.cont [13/16] %v2053_v51, 128 }
 0x1a4   : > { %995 = vxpose.xlu0.b32.cont [14/16] %v2218_v53, 128 }
 0x1a6   : > { %1027 = vxpose.xlu1.b32.cont [14/16] %v2067_v59, 128 }
 0x1a8   : > { %996 = vxpose.xlu0.b32.cont [15/16] %v2197_v32, 128 }
 0x1aa   : > { %1028 = vxpose.xlu1.b32.cont [15/16] %v2081_v4, 128 }
 0x1ac   : > { %997 = vxpose.xlu0.b32.end [16/16] %v2211_v45, 128  ;;  %v934_v0 = vpop.trf.xlu0 }
 0x1ad   : > { %1110 = vst [vmem:[%s2384_s28] sm:$0xff] %v934_v0 }
 0x1ae   : > { %1029 = vxpose.xlu1.b32.end [16/16] %v2096_v11, 128  ;;  %v966_v15 = vpop.trf.xlu1 }
 0x1af   : > { %1142 = vst [vmem:[%s2384_s28 + $0x100] sm:$0xff] %v966_v15 }
 0x1b0   : > { %1046 = vxpose.xlu0.b32.start [1/16] %v2229_v2, 128  ;;  %v935_v19 = vpop.trf.xlu0 }
 0x1b1   : > { %1112 = vst [vmem:[%s2384_s28 + $0x10] sm:$0xff] %v935_v19 }
 0x1b2   : > { %1078 = vxpose.xlu1.b32.start [1/16] %v2235_v3, 128  ;;  %v967_v27 = vpop.trf.xlu1 }
 0x1b3   : > { %1144 = vst [vmem:[%s2384_s28 + $0x110] sm:$0xff] %v967_v27 }
 0x1b4   : > { %1047 = vxpose.xlu0.b32.cont [2/16] %v2247_v17, 128  ;;  %v936_v35 = vpop.trf.xlu0 }
 0x1b5   : > { %1114 = vst [vmem:[%s2384_s28 + $0x20] sm:$0xff] %v936_v35 }
 0x1b6   : > { %1079 = vxpose.xlu1.b32.cont [2/16] %v2253_v20, 128  ;;  %v968_v43 = vpop.trf.xlu1 }
 0x1b7   : > { %1146 = vst [vmem:[%s2384_s28 + $0x120] sm:$0xff] %v968_v43 }
 0x1b8   : > { %1048 = vxpose.xlu0.b32.cont [3/16] %v2265_v33, 128  ;;  %v937_v51 = vpop.trf.xlu0 }
 0x1b9   : > { %1116 = vst [vmem:[%s2384_s28 + $0x30] sm:$0xff] %v937_v51 }
 0x1ba   : > { %1080 = vxpose.xlu1.b32.cont [3/16] %v2225_v60, 128  ;;  %v969_v59 = vpop.trf.xlu1 }
 0x1bb   : > { %1148 = vst [vmem:[%s2384_s28 + $0x130] sm:$0xff] %v969_v59 }
 0x1bc   : > { %1049 = vxpose.xlu0.b32.cont [4/16] %v2283_v49, 128  ;;  %v938_v4 = vpop.trf.xlu0 }
 0x1bd   : > { %1118 = vst [vmem:[%s2384_s28 + $0x40] sm:$0xff] %v938_v4 }
 0x1be   : > { %1081 = vxpose.xlu1.b32.cont [4/16] %v2243_v12, 128  ;;  %v970_v11 = vpop.trf.xlu1 }
 0x1bf   : > { %1150 = vst [vmem:[%s2384_s28 + $0x140] sm:$0xff] %v970_v11 }
 0x1c0   : > { %1050 = vxpose.xlu0.b32.cont [5/16] %v2301_v6, 128  ;;  %v939_v16 = vpop.trf.xlu0 }
 0x1c1   : > { %1120 = vst [vmem:[%s2384_s28 + $0x50] sm:$0xff] %v939_v16 }
 0x1c2   : > { %1082 = vxpose.xlu1.b32.cont [5/16] %v2271_v34, 128  ;;  %v971_v57 = vpop.trf.xlu1 }
 0x1c3   : > { %1152 = vst [vmem:[%s2384_s28 + $0x150] sm:$0xff] %v971_v57 }
 0x1c4   : > { %1051 = vxpose.xlu0.b32.cont [6/16] %v2319_v26, 128  ;;  %v940_v5 = vpop.trf.xlu0 }
 0x1c5   : > { %1122 = vst [vmem:[%s2384_s28 + $0x60] sm:$0xff] %v940_v5 }
 0x1c6   : > { %1083 = vxpose.xlu1.b32.cont [6/16] %v2289_v50, 128  ;;  %v972_v10 = vpop.trf.xlu1 }
 0x1c7   : > { %1154 = vst [vmem:[%s2384_s28 + $0x160] sm:$0xff] %v972_v10 }
 0x1c8   : > { %1052 = vxpose.xlu0.b32.cont [7/16] %v2337_v48, 128  ;;  %v941_v18 = vpop.trf.xlu0 }
 0x1c9   : > { %1124 = vst [vmem:[%s2384_s28 + $0x70] sm:$0xff] %v941_v18 }
 0x1ca   : > { %1084 = vxpose.xlu1.b32.cont [7/16] %v2261_v28, 128  ;;  %v973_v13 = vpop.trf.xlu1 }
 0x1cb   : > { %1156 = vst [vmem:[%s2384_s28 + $0x170] sm:$0xff] %v973_v13 }
 0x1cc   : > { %1053 = vxpose.xlu0.b32.cont [8/16] %v2355_v30, 128  ;;  %v942_v32 = vpop.trf.xlu0 }
 0x1cd   : > { %1126 = vst [vmem:[%s2384_s28 + $0x80] sm:$0xff] %v942_v32 }
 0x1ce   : > { %1085 = vxpose.xlu1.b32.cont [8/16] %v2279_v44, 128  ;;  %v974_v38 = vpop.trf.xlu1 }
 0x1cf   : > { %1158 = vst [vmem:[%s2384_s28 + $0x180] sm:$0xff] %v974_v38 }
 0x1d0   : > { %1054 = vxpose.xlu0.b32.cont [9/16] %v2004_v23, 128  ;;  %v943_v45 = vpop.trf.xlu0 }
 0x1d1   : > { %1128 = vst [vmem:[%s2384_s28 + $0x90] sm:$0xff] %v943_v45 }
 0x1d2   : > { %1086 = vxpose.xlu1.b32.cont [9/16] %v2307_v7, 128  ;;  %v975_v53 = vpop.trf.xlu1 }
 0x1d3   : > { %1160 = vst [vmem:[%s2384_s28 + $0x190] sm:$0xff] %v975_v53 }
 0x1d4   : > { %1055 = vxpose.xlu0.b32.cont [10/16] %v2018_v31, 128  ;;  %v944_v60 = vpop.trf.xlu0 }
 0x1d5   : > { %1130 = vst [vmem:[%s2384_s28 + $0xa0] sm:$0xff] %v944_v60 }
 0x1d6   : > { %1087 = vxpose.xlu1.b32.cont [10/16] %v2325_v41, 128  ;;  %v976_v2 = vpop.trf.xlu1 }
 0x1d7   : > { %1162 = vst [vmem:[%s2384_s28 + $0x1a0] sm:$0xff] %v976_v2 }
 0x1d8   : > { %1056 = vxpose.xlu0.b32.cont [11/16] %v2032_v39, 128  ;;  %v945_v23 = vpop.trf.xlu0 }
 0x1d9   : > { %1132 = vst [vmem:[%s2384_s28 + $0xb0] sm:$0xff] %v945_v23 }
 0x1da   : > { %1088 = vxpose.xlu1.b32.cont [11/16] %v2297_v61, 128  ;;  %v977_v3 = vpop.trf.xlu1 }
 0x1db   : > { %1164 = vst [vmem:[%s2384_s28 + $0x1b0] sm:$0xff] %v977_v3 }
 0x1dc   : > { %1057 = vxpose.xlu0.b32.cont [12/16] %v2046_v47, 128  ;;  %v946_v31 = vpop.trf.xlu0 }
 0x1dd   : > { %1134 = vst [vmem:[%s2384_s28 + $0xc0] sm:$0xff] %v946_v31 }
 0x1de   : > { %1089 = vxpose.xlu1.b32.cont [12/16] %v2315_v22, 128  ;;  %v978_v12 = vpop.trf.xlu1 }
 0x1df   : > { %1166 = vst [vmem:[%s2384_s28 + $0x1c0] sm:$0xff] %v978_v12 }
 0x1e0   : > { %1058 = vxpose.xlu0.b32.cont [13/16] %v2060_v55, 128  ;;  %v947_v39 = vpop.trf.xlu0 }
 0x1e1   : > { %1136 = vst [vmem:[%s2384_s28 + $0xd0] sm:$0xff] %v947_v39 }
 0x1e2   : > { %1090 = vxpose.xlu1.b32.cont [13/16] %v2343_v54, 128  ;;  %v979_v17 = vpop.trf.xlu1 }
 0x1e3   : > { %1168 = vst [vmem:[%s2384_s28 + $0x1d0] sm:$0xff] %v979_v17 }
 0x1e4   : > { %1059 = vxpose.xlu0.b32.cont [14/16] %v2074_v63, 128  ;;  %v948_v47 = vpop.trf.xlu0 }
 0x1e5   : > { %1138 = vst [vmem:[%s2384_s28 + $0xe0] sm:$0xff] %v948_v47 }
 0x1e6   : > { %1091 = vxpose.xlu1.b32.cont [14/16] %v2361_v14, 128  ;;  %v980_v20 = vpop.trf.xlu1 }
 0x1e7   : > { %1170 = vst [vmem:[%s2384_s28 + $0x1e0] sm:$0xff] %v980_v20 }
 0x1e8   : > { %1060 = vxpose.xlu0.b32.cont [15/16] %v2089_v9, 128  ;;  %v949_v55 = vpop.trf.xlu0 }
 0x1e9   : > { %1140 = vst [vmem:[%s2384_s28 + $0xf0] sm:$0xff] %v949_v55 }
 0x1ea   : > { %1092 = vxpose.xlu1.b32.cont [15/16] %v2333_v42, 128  ;;  %v981_v28 = vpop.trf.xlu1 }
 0x1eb   : > { %1172 = vst [vmem:[%s2384_s28 + $0x1f0] sm:$0xff] %v981_v28 }
 0x1ec   : > { %1061 = vxpose.xlu0.b32.end [16/16] %v2106_v21, 128  ;;  %v998_v63 = vpop.trf.xlu0 }
 0x1ed   : > { %1174 = vst [vmem:[%s2384_s28 + $0x200] sm:$0xff] %v998_v63 }
 0x1ee   : > { %1093 = vxpose.xlu1.b32.end [16/16] %v2351_v1, 128  ;;  %v1030_v9 = vpop.trf.xlu1 }
 0x1ef   : > { %1656 = shalt.err (!%p1653_p0)
}
 0x1f0   : > { %s1657_s8 = scalar_lea.hbm %s2456_s14, 12288  ;;  %s1661_s24 = scalar_lea.hbm %s2603_s3, 24576 }
 0x1f1   : > { %p1658_p5 = scmp.ne.s32.totalorder %s2456_s14, %s1657_s8  ;;  %p1662_p4 = scmp.lt.s32.totalorder %s2456_s14, %s2603_s3 }
 0x1f2   : > { %p1663_p6 = scmp.lt.s32.totalorder %s1661_s24, %s1657_s8 }
 0x1f3   : > { %p1659_p9 = pnand %p1658_p5, %p2620_p11 }
 0x1f4   : > { %p1664_p8 = por %p1663_p6, %p1662_p4 }
 0x1f5   : > { %p1660_p1 = pneg %p1659_p9 }
 0x1f7   : > { %p1665_p3 = pnand %p1664_p8, %p1660_p1 }
 0x1f9   : > { %1668 = shalt.err (!%p1665_p3)
}
 0x1fa   : > { %s1751_s13 = smov 384   ;;  %s1752_s25 = smov 24   ;;  %1111 = vst [vmem:[%s2384_s28 + $0x8] sm:$0xff] %v1030_v9  ;;  %v999_v21 = vpop.trf.xlu0  ;;  %v1031_v33 = vpop.trf.xlu1 }
 0x1fb   : > { %1492 = dma.vmem_to_hbm [thread:$0]  (%p2620_p11), %s2459_s12, 12288, %s2456_s14, %s1207_s20, %s1751_s13, %s1751_s13, %s1752_s25  }
 0x1fc   : > { %1176 = vst [vmem:[%s2384_s28 + $0x210] sm:$0xff] %v999_v21  ;;  %1113 = vst [vmem:[%s2384_s28 + $0x18] sm:$0xff] %v1031_v33  ;;  %s1241_s12 = sshll.u32 %s2384_s28, 4  ;;  %s2553_s30 = scalar_lea.hbm %s2604_s4, %s1484_s29  ;;  %s2555_s12 = int_to_ptr.vmem [resolvable:$true] %s1241_s12 }
 0x1fd   : > { %s1212_s6 = scalar_lea.sflag [#allocation9], %s1897_s5  ;;  %s1669_s7 = scalar_lea.vmem %s2555_s12, 12288 }
 0x1fe   : > { %v1000_v34 = vpop.trf.xlu0  ;;  %v1032_v44 = vpop.trf.xlu1  ;;  %p1670_p7 = scmp.ne.s32.totalorder %s2555_s12, %s1669_s7  ;;  %s1753_s19 = smov [#allocation8]  }
 0x1ff   : > { %1178 = vst [vmem:[%s2384_s28 + $0x220] sm:$0xff] %v1000_v34  ;;  %1115 = vst [vmem:[%s2384_s28 + $0x28] sm:$0xff] %v1032_v44  ;;  %s1673_s8 = sshll.u32 %s1753_s19, 4  ;;  %s1674_s8 = int_to_ptr.vmem [resolvable:$false] %s1673_s8 }
 0x200   : > { %p1671_p12 = pnand %p1670_p7, %p2620_p11  ;;  %s1675_s21 = scalar_lea.vmem %s1674_s8, 24576 }
 0x201   : > { %p1676_p2 = scmp.lt.s32.totalorder %s2555_s12, %s1674_s8  ;;  %p1677_p13 = scmp.lt.s32.totalorder %s1675_s21, %s1669_s7 }
 0x202   : > { %v1001_v49 = vpop.trf.xlu0  ;;  %v1033_v50 = vpop.trf.xlu1  ;;  %p1672_p10 = pneg %p1671_p12 }
 0x203   : > { %1180 = vst [vmem:[%s2384_s28 + $0x230] sm:$0xff] %v1001_v49  ;;  %1117 = vst [vmem:[%s2384_s28 + $0x38] sm:$0xff] %v1033_v50  ;;  %p1678_p0 = por %p1677_p13, %p1676_p2 }
 0x205   : > { %p1679_p5 = pnand %p1678_p0, %p1672_p10 }
 0x206   : > { %v1002_v61 = vpop.trf.xlu0  ;;  %v1034_v6 = vpop.trf.xlu1 }
 0x207   : > { %1182 = vst [vmem:[%s2384_s28 + $0x240] sm:$0xff] %v1002_v61  ;;  %1119 = vst [vmem:[%s2384_s28 + $0x48] sm:$0xff] %v1034_v6 }
 0x20a   : > { %v1003_v7 = vpop.trf.xlu0  ;;  %v1035_v22 = vpop.trf.xlu1 }
 0x20b   : > { %1184 = vst [vmem:[%s2384_s28 + $0x250] sm:$0xff] %v1003_v7  ;;  %1121 = vst [vmem:[%s2384_s28 + $0x58] sm:$0xff] %v1035_v22 }
 0x20e   : > { %v1004_v52 = vpop.trf.xlu0  ;;  %v1036_v24 = vpop.trf.xlu1 }
 0x20f   : > { %1186 = vst [vmem:[%s2384_s28 + $0x260] sm:$0xff] %v1004_v52  ;;  %1123 = vst [vmem:[%s2384_s28 + $0x68] sm:$0xff] %v1036_v24 }
 0x212   : > { %v1005_v26 = vpop.trf.xlu0  ;;  %v1037_v41 = vpop.trf.xlu1 }
 0x213   : > { %1188 = vst [vmem:[%s2384_s28 + $0x270] sm:$0xff] %v1005_v26  ;;  %1125 = vst [vmem:[%s2384_s28 + $0x78] sm:$0xff] %v1037_v41 }
 0x216   : > { %v1006_v29 = vpop.trf.xlu0  ;;  %v1038_v37 = vpop.trf.xlu1 }
 0x217   : > { %1190 = vst [vmem:[%s2384_s28 + $0x280] sm:$0xff] %v1006_v29  ;;  %1127 = vst [vmem:[%s2384_s28 + $0x88] sm:$0xff] %v1038_v37 }
 0x21a   : > { %v1007_v40 = vpop.trf.xlu0  ;;  %v1039_v42 = vpop.trf.xlu1 }
 0x21b   : > { %1192 = vst [vmem:[%s2384_s28 + $0x290] sm:$0xff] %v1007_v40  ;;  %1129 = vst [vmem:[%s2384_s28 + $0x98] sm:$0xff] %v1039_v42 }
 0x21e   : > { %v1008_v62 = vpop.trf.xlu0  ;;  %v1040_v25 = vpop.trf.xlu1 }
 0x21f   : > { %1194 = vst [vmem:[%s2384_s28 + $0x2a0] sm:$0xff] %v1008_v62  ;;  %1131 = vst [vmem:[%s2384_s28 + $0xa8] sm:$0xff] %v1040_v25 }
 0x222   : > { %v1009_v48 = vpop.trf.xlu0  ;;  %v1041_v54 = vpop.trf.xlu1 }
 0x223   : > { %1196 = vst [vmem:[%s2384_s28 + $0x2b0] sm:$0xff] %v1009_v48  ;;  %1133 = vst [vmem:[%s2384_s28 + $0xb8] sm:$0xff] %v1041_v54 }
 0x226   : > { %v1010_v56 = vpop.trf.xlu0  ;;  %v1042_v58 = vpop.trf.xlu1 }
 0x227   : > { %1198 = vst [vmem:[%s2384_s28 + $0x2c0] sm:$0xff] %v1010_v56  ;;  %1135 = vst [vmem:[%s2384_s28 + $0xc8] sm:$0xff] %v1042_v58 }
 0x22a   : > { %v1011_v36 = vpop.trf.xlu0  ;;  %v1043_v1 = vpop.trf.xlu1 }
 0x22b   : > { %1200 = vst [vmem:[%s2384_s28 + $0x2d0] sm:$0xff] %v1011_v36  ;;  %1137 = vst [vmem:[%s2384_s28 + $0xd8] sm:$0xff] %v1043_v1 }
 0x22e   : > { %v1012_v46 = vpop.trf.xlu0  ;;  %v1044_v8 = vpop.trf.xlu1 }
 0x22f   : > { %1202 = vst [vmem:[%s2384_s28 + $0x2e0] sm:$0xff] %v1012_v46  ;;  %1139 = vst [vmem:[%s2384_s28 + $0xe8] sm:$0xff] %v1044_v8 }
 0x232   : > { %v1013_v30 = vpop.trf.xlu0  ;;  %v1045_v14 = vpop.trf.xlu1 }
 0x233   : > { %1204 = vst [vmem:[%s2384_s28 + $0x2f0] sm:$0xff] %v1013_v30  ;;  %1141 = vst [vmem:[%s2384_s28 + $0xf8] sm:$0xff] %v1045_v14 }
 0x236   : > { %v1062_v0 = vpop.trf.xlu0  ;;  %v1094_v15 = vpop.trf.xlu1 }
 0x237   : > { %1143 = vst [vmem:[%s2384_s28 + $0x108] sm:$0xff] %v1062_v0  ;;  %1175 = vst [vmem:[%s2384_s28 + $0x208] sm:$0xff] %v1094_v15 }
 0x23a   : > { %v1063_v19 = vpop.trf.xlu0  ;;  %v1095_v27 = vpop.trf.xlu1 }
 0x23b   : > { %1145 = vst [vmem:[%s2384_s28 + $0x118] sm:$0xff] %v1063_v19  ;;  %1177 = vst [vmem:[%s2384_s28 + $0x218] sm:$0xff] %v1095_v27 }
 0x23e   : > { %v1064_v35 = vpop.trf.xlu0  ;;  %v1096_v43 = vpop.trf.xlu1 }
 0x23f   : > { %1147 = vst [vmem:[%s2384_s28 + $0x128] sm:$0xff] %v1064_v35  ;;  %1179 = vst [vmem:[%s2384_s28 + $0x228] sm:$0xff] %v1096_v43 }
 0x242   : > { %v1065_v51 = vpop.trf.xlu0  ;;  %v1097_v59 = vpop.trf.xlu1 }
 0x243   : > { %1149 = vst [vmem:[%s2384_s28 + $0x138] sm:$0xff] %v1065_v51  ;;  %1181 = vst [vmem:[%s2384_s28 + $0x238] sm:$0xff] %v1097_v59 }
 0x246   : > { %v1066_v4 = vpop.trf.xlu0  ;;  %v1098_v11 = vpop.trf.xlu1 }
 0x247   : > { %1151 = vst [vmem:[%s2384_s28 + $0x148] sm:$0xff] %v1066_v4  ;;  %1183 = vst [vmem:[%s2384_s28 + $0x248] sm:$0xff] %v1098_v11 }
 0x24a   : > { %v1067_v16 = vpop.trf.xlu0  ;;  %v1099_v57 = vpop.trf.xlu1 }
 0x24b   : > { %1153 = vst [vmem:[%s2384_s28 + $0x158] sm:$0xff] %v1067_v16  ;;  %1185 = vst [vmem:[%s2384_s28 + $0x258] sm:$0xff] %v1099_v57 }
 0x24e   : > { %v1068_v5 = vpop.trf.xlu0  ;;  %v1100_v10 = vpop.trf.xlu1 }
 0x24f   : > { %1155 = vst [vmem:[%s2384_s28 + $0x168] sm:$0xff] %v1068_v5  ;;  %1187 = vst [vmem:[%s2384_s28 + $0x268] sm:$0xff] %v1100_v10 }
 0x252   : > { %v1069_v18 = vpop.trf.xlu0  ;;  %v1101_v13 = vpop.trf.xlu1 }
 0x253   : > { %1157 = vst [vmem:[%s2384_s28 + $0x178] sm:$0xff] %v1069_v18  ;;  %1189 = vst [vmem:[%s2384_s28 + $0x278] sm:$0xff] %v1101_v13 }
 0x256   : > { %v1070_v32 = vpop.trf.xlu0  ;;  %v1102_v38 = vpop.trf.xlu1 }
 0x257   : > { %1159 = vst [vmem:[%s2384_s28 + $0x188] sm:$0xff] %v1070_v32  ;;  %1191 = vst [vmem:[%s2384_s28 + $0x288] sm:$0xff] %v1102_v38 }
 0x25a   : > { %v1071_v45 = vpop.trf.xlu0  ;;  %v1103_v53 = vpop.trf.xlu1 }
 0x25b   : > { %1161 = vst [vmem:[%s2384_s28 + $0x198] sm:$0xff] %v1071_v45  ;;  %1193 = vst [vmem:[%s2384_s28 + $0x298] sm:$0xff] %v1103_v53 }
 0x25e   : > { %v1072_v60 = vpop.trf.xlu0  ;;  %v1104_v2 = vpop.trf.xlu1 }
 0x25f   : > { %1163 = vst [vmem:[%s2384_s28 + $0x1a8] sm:$0xff] %v1072_v60  ;;  %1195 = vst [vmem:[%s2384_s28 + $0x2a8] sm:$0xff] %v1104_v2 }
 0x262   : > { %v1073_v23 = vpop.trf.xlu0  ;;  %v1105_v3 = vpop.trf.xlu1 }
 0x263   : > { %1165 = vst [vmem:[%s2384_s28 + $0x1b8] sm:$0xff] %v1073_v23  ;;  %1197 = vst [vmem:[%s2384_s28 + $0x2b8] sm:$0xff] %v1105_v3 }
 0x266   : > { %v1074_v31 = vpop.trf.xlu0  ;;  %v1106_v12 = vpop.trf.xlu1 }
 0x267   : > { %1167 = vst [vmem:[%s2384_s28 + $0x1c8] sm:$0xff] %v1074_v31  ;;  %1199 = vst [vmem:[%s2384_s28 + $0x2c8] sm:$0xff] %v1106_v12 }
 0x26a   : > { %v1075_v39 = vpop.trf.xlu0  ;;  %v1107_v17 = vpop.trf.xlu1 }
 0x26b   : > { %1169 = vst [vmem:[%s2384_s28 + $0x1d8] sm:$0xff] %v1075_v39  ;;  %1201 = vst [vmem:[%s2384_s28 + $0x2d8] sm:$0xff] %v1107_v17 }
 0x26e   : > { %v1076_v47 = vpop.trf.xlu0  ;;  %v1108_v20 = vpop.trf.xlu1 }
 0x26f   : > { %1171 = vst [vmem:[%s2384_s28 + $0x1e8] sm:$0xff] %v1076_v47  ;;  %1203 = vst [vmem:[%s2384_s28 + $0x2e8] sm:$0xff] %v1108_v20 }
 0x272   : > { %v1077_v55 = vpop.trf.xlu0  ;;  %v1109_v28 = vpop.trf.xlu1 }
 0x273   : > { %1173 = vst [vmem:[%s2384_s28 + $0x1f8] sm:$0xff] %v1077_v55  ;;  %1205 = vst [vmem:[%s2384_s28 + $0x2f8] sm:$0xff] %v1109_v28 }
 0x274   : > { %1682 = shalt.err (!%p1679_p5)
}
 0x275   : > { %s1683_s28 = scalar_lea.hbm %s2553_s30, 12288  ;;  %s1687_s24 = scalar_lea.hbm %s2604_s4, 24576 }
 0x276   : > { %p1684_p9 = scmp.ne.s32.totalorder %s2553_s30, %s1683_s28  ;;  %p1688_p6 = scmp.lt.s32.totalorder %s2553_s30, %s2604_s4 }
 0x277   : > { %p1689_p8 = scmp.lt.s32.totalorder %s1687_s24, %s1683_s28 }
 0x278   : > { %p1685_p1 = pnand %p1684_p9, %p2620_p11 }
 0x279   : > { %p1690_p3 = por %p1689_p8, %p1688_p6 }
 0x27a   : > { %p1686_p4 = pneg %p1685_p1 }
 0x27c   : > { %p1691_p7 = pnand %p1690_p3, %p1686_p4 }
 0x27e   : > { %1694 = shalt.err (!%p1691_p7)
}
 0x27f   : > { %s1754_s13 = smov 256   ;;  %s1755_s25 = smov 16  }
 0x280   : > { %1493 = dma.vmem_to_hbm [thread:$0]  (%p2620_p11), %s2555_s12, 12288, %s2553_s30, %s1212_s6, %s1754_s13, %s1754_s13, %s1755_s25  }
 0x281 PF: > { %s1256_s14 = sand.u32 1, %s1729_s15   ;;  %p2621_p12 = scmp.ne.s32.totalorder %s2610_s22, 0 }
 0x282   : > { %p2622_p10 = scmp.ge.s32.totalorder %s1741_s18, 2  ;;  %s1257_s20 = scalar_lea.sflag [#allocation4], %s1256_s14 }
 0x284   : > { %p1505_p2 = pnand %p2622_p10, %p2621_p12 }
 0x286   : > { %p1506_p13 = pneg %p1505_p2 }
 0x288   : > { %1720 = dma.done.wait (%p1506_p13), %s1257_s20, 12288  }
 0x289   : > { %1722 = vsyncadd (%p1506_p13), %s1257_s20, 4294955008  ;;  %s1266_s7 = scalar_lea.sflag [#allocation9], %s1256_s14 }
 0x28a   : > { %1724 = dma.done.wait (%p1506_p13), %s1266_s7, 12288  }
 0x28b   : > { %1726 = vsyncadd (%p1506_p13), %s1266_s7, 4294955008  ;;  %p22_p11 = scmp.ge.s32.totalorder %s1835_s27, 4   ;;  %s2623_s15 = smov %s1733_s16 }
 0x28c   : > { %s2624_s16 = smov %s1737_s17  ;;  %s2625_s17 = smov %s1852_s9 }
 0x28d   : > { %s2626_s18 = smov %s1835_s27  ;;  %24 = sbr.rel (!%p22_p11) target bundleno = 8 (0x8), region = 98 }
 0x292   :  { %1271 = vsyncpa [#allocation3], 1 }
 0x293   :  { %1273 = vsyncpa [#allocation3 + $0x1], 1 }
 0x294   :  { %1274 = vsyncpa [#allocation6], 1 }
 0x295   :  { %1275 = vsyncpa [#allocation4], 1 }
 0x296   :  { %1277 = vsyncpa [#allocation4 + $0x1], 1 }
 0x297   :  { %1278 = vsyncpa [#allocation9], 1 }
 0x298   :  { %1280 = vsyncpa [#allocation9 + $0x1], 1 }

</bundles_post_ra>
